<compile_context>
chip_gen: v5e
topology: v5e:2x2
jax: 0.10.0
libtpu: 0.0.40
codegen_flags: <defaults>
</compile_context>

<pallas_src>
import jax
import jax.numpy as jnp
from jax.experimental import pallas as pl
from jax.experimental.pallas import tpu as pltpu

INPUT_SIZE = 784
IN_PAD = 896                 # 784 padded to a multiple of 128 (lane-dense input / clean MXU K)
HIDDEN_SIZES = [512, 256, 256, 128]
NUM_CLASS = 10
OUT_PAD = 128                # classifier padded to 128 lanes -> unmasked lane-dense stores
MAX_TB = 1024                # largest batch tile considered
STEP_OVERHEAD_SAMPLES = 64   # ~0.35us fixed per-grid-step overhead expressed in "samples"


def _round_up(a, m):
    return (a + m - 1) // m * m


def _choose_tb(B):
    """Batch tile: multiple of 16 (bf16 sublane packing), <= MAX_TB.
    Trades batch-padding waste against per-grid-step overhead and keeps
    >= 2 grid steps (v7x megacore) whenever possible."""
    if B <= 8:
        return 8               # block == full array, always legal
    if B <= 16:
        return 16
    best_tb, best_score = None, None
    for tb in range(16, MAX_TB + 1, 16):
        steps = -(-B // tb)    # cdiv
        if steps < 2:          # larger tiles only add padding waste
            break
        score = steps * tb + steps * STEP_OVERHEAD_SAMPLES
        if (best_score is None or score < best_score
                or (score == best_score and tb > best_tb)):
            best_tb, best_score = tb, score
    if best_tb is None:        # no multiple-of-16 tile gives 2 steps (e.g. B == 16)
        best_tb = min(MAX_TB, _round_up(B, 16))
    return best_tb


def _mlp_kernel(x_ref,
                w1_ref, b1_ref, w2_ref, b2_ref, w3_ref, b3_ref,
                w4_ref, b4_ref, w5_ref, b5_ref,
                o_ref, h_ref):
    """Fused 5-layer MLP: bf16 MXU matmuls, f32 accumulate + bias + ReLU (VPU),
    bf16 activation staging through VMEM scratch, bf16 lane-dense output."""

    def layer(h, w_ref, b_ref, width):
        y = jnp.dot(h, w_ref[...], preferred_element_type=jnp.float32) + b_ref[...]
        # ReLU then round to bf16 (== round then ReLU for these values).
        h_ref[:, :width] = jnp.maximum(y, 0.0).astype(jnp.bfloat16)
        return h_ref[:, :width]

    h = x_ref[...]                                   # (TB, 896) bf16 input tile
    h = layer(h, w1_ref, b1_ref, 512)
    h = layer(h, w2_ref, b2_ref, 256)
    h = layer(h, w3_ref, b3_ref, 256)
    h = layer(h, w4_ref, b4_ref, 128)
    # Final classifier (padded to 128 lanes, no activation): unmasked bf16 store.
    o_ref[...] = (jnp.dot(h, w5_ref[...], preferred_element_type=jnp.float32)
                  + b5_ref[...]).astype(jnp.bfloat16)


def prepare_params(params):
    """One-time param prep: bf16 weights, (1, N) f32 biases.
    First layer's weight rows padded 784 -> 896 (zeros); last layer padded to 128 lanes."""
    flat = []
    n = len(params)
    for i, (w, b) in enumerate(params):
        w = w.astype(jnp.float32)
        b = b.astype(jnp.float32).reshape(1, -1)
        if i == 0:
            w = jnp.pad(w, ((0, IN_PAD - w.shape[0]), (0, 0)))
        if i == n - 1:
            w = jnp.pad(w, ((0, 0), (0, OUT_PAD - w.shape[1])))
            b = jnp.pad(b, ((0, 0), (0, OUT_PAD - b.shape[1])))
        flat.append(w.astype(jnp.bfloat16))   # bf16 weights: half HBM traffic, 2x MXU rate
        flat.append(b)                        # biases stay f32
    return tuple(flat)


def base_net_forward(x, flat_params):
    """x: (B, C, H, W) -> logits (B, NUM_CLASS) in f32. Flatten/pad/slice is plain-JAX glue."""
    B = x.shape[0]
    x2d = x.reshape(B, -1).astype(jnp.bfloat16)      # x.view(x.shape[0], -1), fed as bf16
    assert x2d.shape[1] == INPUT_SIZE
    x2d = jnp.pad(x2d, ((0, 0), (0, IN_PAD - INPUT_SIZE)))   # zero-pad K to 896

    TB = _choose_tb(B)
    Bpad = _round_up(B, TB)
    if Bpad != B:
        x2d = jnp.pad(x2d, ((0, Bpad - B), (0, 0)))
    grid = (Bpad // TB,)

    # Input/output tiles walk the batch grid; weights/biases use a constant
    # block index so they are fetched once and stay resident in VMEM.
    x_spec = pl.BlockSpec((TB, IN_PAD), lambda i: (i, 0))
    resident = lambda a: pl.BlockSpec(a.shape, lambda i: (0, 0))
    in_specs = [x_spec] + [resident(a) for a in flat_params]
    out_spec = pl.BlockSpec((TB, OUT_PAD), lambda i: (i, 0))
    out_shape = jax.ShapeDtypeStruct((Bpad, OUT_PAD), jnp.bfloat16)

    param_bytes = sum(int(a.size) * a.dtype.itemsize for a in flat_params)
    flops = 2 * Bpad * (IN_PAD * 512 + 512 * 256 + 256 * 256 + 256 * 128
                        + 128 * OUT_PAD)
    cost = pl.CostEstimate(
        flops=int(flops),
        transcendentals=0,
        bytes_accessed=int(x2d.size) * 2 + param_bytes + Bpad * OUT_PAD * 2)

    out = pl.pallas_call(
        _mlp_kernel,
        grid=grid,
        in_specs=in_specs,
        out_specs=out_spec,
        out_shape=out_shape,
        scratch_shapes=[pltpu.VMEM((TB, 512), jnp.bfloat16)],   # bf16 activation staging
        compiler_params=pltpu.CompilerParams(
            dimension_semantics=("parallel",),   # batch axis shards across v7x's 2 TCs
            vmem_limit_bytes=32 << 20),          # ample even at TB=1024 (~12 MiB working set)
        cost_estimate=cost,
    )(x2d, *flat_params)

    return out[:B, :NUM_CLASS].astype(jnp.float32)


def init_params(key):
    """Deterministic PyTorch-style Linear init: U(-1/sqrt(fan_in), 1/sqrt(fan_in))."""
    sizes = [INPUT_SIZE] + HIDDEN_SIZES + [NUM_CLASS]
    params = []
    for i in range(len(sizes) - 1):
        fan_in, fan_out = sizes[i], sizes[i + 1]
        key, kw, kb = jax.random.split(key, 3)
        bound = 1.0 / (fan_in ** 0.5)
        w = jax.random.uniform(kw, (fan_in, fan_out), jnp.float32, -bound, bound)
        b = jax.random.uniform(kb, (fan_out,), jnp.float32, -bound, bound)
        params.append((w, b))
    return params


def reference_forward_f32(x, params):
    """Pure-JAX f32 reference (original module semantics)."""
    h = x.reshape(x.shape[0], -1).astype(jnp.float32)
    for i, (w, b) in enumerate(params):
        h = h @ w + b
        if i < len(params) - 1:
            h = jnp.maximum(h, 0.0)
    return h


def reference_forward_bf16(x, flat_params):
    """Pure-JAX reference mimicking the kernel's bf16-input / bf16-staging /
    f32-accumulate numerics exactly."""
    B = x.shape[0]
    h = x.reshape(B, -1).astype(jnp.bfloat16)
    h = jnp.pad(h, ((0, 0), (0, IN_PAD - h.shape[1])))
    n = len(flat_params) // 2
    y = None
    for i in range(n):
        w, b = flat_params[2 * i], flat_params[2 * i + 1]
        y = jnp.dot(h, w, preferred_element_type=jnp.float32) + b
        if i < n - 1:
            h = jnp.maximum(y, 0.0).astype(jnp.bfloat16)
        else:
            y = y.astype(jnp.bfloat16)
    return y[:, :NUM_CLASS].astype(jnp.float32)


if __name__ == "__main__":
    key = jax.random.PRNGKey(0)
    key, kx = jax.random.split(key)
    # Small MNIST-like input: batch=2, 1 channel, 28x28 -> flattens to 784.
    x = jax.random.normal(kx, (2, 1, 28, 28), dtype=jnp.float32)

    params = init_params(jax.random.PRNGKey(0))
    flat = prepare_params(params)            # one-time bf16 cast / reshape / pad

    out = jax.block_until_ready(base_net_forward(x, flat))
    assert out.shape == (2, NUM_CLASS)

    # Tight check vs. a reference with identical bf16/f32 mixed precision.
    ref_q = reference_forward_bf16(x, flat)
    assert jnp.allclose(out, ref_q, atol=2e-2, rtol=2e-2), "mismatch vs bf16 reference"
    # Loose semantic check vs. the full-f32 reference (bf16 rounding of inputs/weights/acts).
    ref_f = reference_forward_f32(x, params)
    assert jnp.allclose(out, ref_f, atol=1e-1, rtol=1e-1), "mismatch vs f32 reference"

    print("KERNEL_OK")
</pallas_src>

<mosaic_0001>
module attributes {stable_mosaic.version = 11 : i64} {
  func.func @_mlp_kernel(%arg0: i32, %arg1: memref<8x896xbf16, #tpu.memory_space<vmem>>, %arg2: memref<896x512xbf16, #tpu.memory_space<vmem>>, %arg3: memref<1x512xf32, #tpu.memory_space<vmem>>, %arg4: memref<512x256xbf16, #tpu.memory_space<vmem>>, %arg5: memref<1x256xf32, #tpu.memory_space<vmem>>, %arg6: memref<256x256xbf16, #tpu.memory_space<vmem>>, %arg7: memref<1x256xf32, #tpu.memory_space<vmem>>, %arg8: memref<256x128xbf16, #tpu.memory_space<vmem>>, %arg9: memref<1x128xf32, #tpu.memory_space<vmem>>, %arg10: memref<128x128xbf16, #tpu.memory_space<vmem>>, %arg11: memref<1x128xf32, #tpu.memory_space<vmem>>, %arg12: memref<8x128xbf16, #tpu.memory_space<vmem>>, %arg13: memref<8x512xbf16, #tpu.memory_space<vmem>>) attributes {dimension_semantics = [#tpu.dimension_semantics<parallel>], iteration_bounds = array<i64: 1>, scalar_prefetch = 0 : i64, scratch_operands = 1 : i64, tpu.core_type = #tpu.core_type<tc>, window_params = [{transform_indices = @transform_0, window_bounds = array<i64: 8, 896>}, {pipeline_mode = #tpu.pipeline_mode<synchronous>, transform_indices = @transform_1, window_bounds = array<i64: 896, 512>}, {pipeline_mode = #tpu.pipeline_mode<synchronous>, transform_indices = @transform_2, window_bounds = array<i64: 1, 512>}, {pipeline_mode = #tpu.pipeline_mode<synchronous>, transform_indices = @transform_3, window_bounds = array<i64: 512, 256>}, {pipeline_mode = #tpu.pipeline_mode<synchronous>, transform_indices = @transform_4, window_bounds = array<i64: 1, 256>}, {pipeline_mode = #tpu.pipeline_mode<synchronous>, transform_indices = @transform_5, window_bounds = array<i64: 256, 256>}, {pipeline_mode = #tpu.pipeline_mode<synchronous>, transform_indices = @transform_6, window_bounds = array<i64: 1, 256>}, {pipeline_mode = #tpu.pipeline_mode<synchronous>, transform_indices = @transform_7, window_bounds = array<i64: 256, 128>}, {pipeline_mode = #tpu.pipeline_mode<synchronous>, transform_indices = @transform_8, window_bounds = array<i64: 1, 128>}, {pipeline_mode = #tpu.pipeline_mode<synchronous>, transform_indices = @transform_9, window_bounds = array<i64: 128, 128>}, {pipeline_mode = #tpu.pipeline_mode<synchronous>, transform_indices = @transform_10, window_bounds = array<i64: 1, 128>}, {transform_indices = @transform_11, window_bounds = array<i64: 8, 128>}]} {
    %c0 = arith.constant 0 : index
    %c0_0 = arith.constant 0 : index
    %0 = vector.load %arg1[%c0, %c0_0] : memref<8x896xbf16, #tpu.memory_space<vmem>>, vector<8x896xbf16>
    %c0_1 = arith.constant 0 : index
    %c0_2 = arith.constant 0 : index
    %1 = vector.load %arg2[%c0_1, %c0_2] : memref<896x512xbf16, #tpu.memory_space<vmem>>, vector<896x512xbf16>
    %cst = arith.constant dense<0.000000e+00> : vector<8x512xf32>
    %2 = tpu.matmul %0, %1, %cst {dimension_numbers = #tpu.dot_dimension_numbers<[1], [0], [0], [1], [0, 0, 1, 1], [], []>} : vector<8x896xbf16>, vector<896x512xbf16>, vector<8x512xf32> -> vector<8x512xf32>
    %c0_3 = arith.constant 0 : index
    %c0_4 = arith.constant 0 : index
    %3 = vector.load %arg3[%c0_3, %c0_4] : memref<1x512xf32, #tpu.memory_space<vmem>>, vector<1x512xf32>
    %4 = vector.broadcast %3 : vector<1x512xf32> to vector<8x512xf32>
    %5 = arith.addf %2, %4 : vector<8x512xf32>
    %cst_5 = arith.constant 0.000000e+00 : f32
    %6 = vector.broadcast %cst_5 : f32 to vector<8x512xf32>
    %7 = arith.maximumf %5, %6 : vector<8x512xf32>
    %8 = arith.truncf %7 : vector<8x512xf32> to vector<8x512xbf16>
    %c0_6 = arith.constant 0 : index
    %c0_7 = arith.constant 0 : index
    %9 = vector.load %arg13[%c0_6, %c0_7] : memref<8x512xbf16, #tpu.memory_space<vmem>>, vector<8x512xbf16>
    tpu.vector_store %arg13[%c0_6, %c0_7], %8 {strides = array<i32>} : memref<8x512xbf16, #tpu.memory_space<vmem>>, vector<8x512xbf16>,
    %c0_8 = arith.constant 0 : index
    %c0_9 = arith.constant 0 : index
    %10 = vector.load %arg13[%c0_8, %c0_9] : memref<8x512xbf16, #tpu.memory_space<vmem>>, vector<8x512xbf16>
    %c0_10 = arith.constant 0 : index
    %c0_11 = arith.constant 0 : index
    %11 = vector.load %arg4[%c0_10, %c0_11] : memref<512x256xbf16, #tpu.memory_space<vmem>>, vector<512x256xbf16>
    %cst_12 = arith.constant dense<0.000000e+00> : vector<8x256xf32>
    %12 = tpu.matmul %10, %11, %cst_12 {dimension_numbers = #tpu.dot_dimension_numbers<[1], [0], [0], [1], [0, 0, 1, 1], [], []>} : vector<8x512xbf16>, vector<512x256xbf16>, vector<8x256xf32> -> vector<8x256xf32>
    %c0_13 = arith.constant 0 : index
    %c0_14 = arith.constant 0 : index
    %13 = vector.load %arg5[%c0_13, %c0_14] : memref<1x256xf32, #tpu.memory_space<vmem>>, vector<1x256xf32>
    %14 = vector.broadcast %13 : vector<1x256xf32> to vector<8x256xf32>
    %15 = arith.addf %12, %14 : vector<8x256xf32>
    %cst_15 = arith.constant 0.000000e+00 : f32
    %16 = vector.broadcast %cst_15 : f32 to vector<8x256xf32>
    %17 = arith.maximumf %15, %16 : vector<8x256xf32>
    %18 = arith.truncf %17 : vector<8x256xf32> to vector<8x256xbf16>
    %c0_16 = arith.constant 0 : index
    %c0_17 = arith.constant 0 : index
    %19 = vector.load %arg13[%c0_16, %c0_17] : memref<8x512xbf16, #tpu.memory_space<vmem>>, vector<8x256xbf16>
    tpu.vector_store %arg13[%c0_16, %c0_17], %18 {strides = array<i32>} : memref<8x512xbf16, #tpu.memory_space<vmem>>, vector<8x256xbf16>,
    %c0_18 = arith.constant 0 : index
    %c0_19 = arith.constant 0 : index
    %20 = vector.load %arg13[%c0_18, %c0_19] : memref<8x512xbf16, #tpu.memory_space<vmem>>, vector<8x256xbf16>
    %c0_20 = arith.constant 0 : index
    %c0_21 = arith.constant 0 : index
    %21 = vector.load %arg6[%c0_20, %c0_21] : memref<256x256xbf16, #tpu.memory_space<vmem>>, vector<256x256xbf16>
    %cst_22 = arith.constant dense<0.000000e+00> : vector<8x256xf32>
    %22 = tpu.matmul %20, %21, %cst_22 {dimension_numbers = #tpu.dot_dimension_numbers<[1], [0], [0], [1], [0, 0, 1, 1], [], []>} : vector<8x256xbf16>, vector<256x256xbf16>, vector<8x256xf32> -> vector<8x256xf32>
    %c0_23 = arith.constant 0 : index
    %c0_24 = arith.constant 0 : index
    %23 = vector.load %arg7[%c0_23, %c0_24] : memref<1x256xf32, #tpu.memory_space<vmem>>, vector<1x256xf32>
    %24 = vector.broadcast %23 : vector<1x256xf32> to vector<8x256xf32>
    %25 = arith.addf %22, %24 : vector<8x256xf32>
    %cst_25 = arith.constant 0.000000e+00 : f32
    %26 = vector.broadcast %cst_25 : f32 to vector<8x256xf32>
    %27 = arith.maximumf %25, %26 : vector<8x256xf32>
    %28 = arith.truncf %27 : vector<8x256xf32> to vector<8x256xbf16>
    %c0_26 = arith.constant 0 : index
    %c0_27 = arith.constant 0 : index
    %29 = vector.load %arg13[%c0_26, %c0_27] : memref<8x512xbf16, #tpu.memory_space<vmem>>, vector<8x256xbf16>
    tpu.vector_store %arg13[%c0_26, %c0_27], %28 {strides = array<i32>} : memref<8x512xbf16, #tpu.memory_space<vmem>>, vector<8x256xbf16>,
    %c0_28 = arith.constant 0 : index
    %c0_29 = arith.constant 0 : index
    %30 = vector.load %arg13[%c0_28, %c0_29] : memref<8x512xbf16, #tpu.memory_space<vmem>>, vector<8x256xbf16>
    %c0_30 = arith.constant 0 : index
    %c0_31 = arith.constant 0 : index
    %31 = vector.load %arg8[%c0_30, %c0_31] : memref<256x128xbf16, #tpu.memory_space<vmem>>, vector<256x128xbf16>
    %cst_32 = arith.constant dense<0.000000e+00> : vector<8x128xf32>
    %32 = tpu.matmul %30, %31, %cst_32 {dimension_numbers = #tpu.dot_dimension_numbers<[1], [0], [0], [1], [0, 0, 1, 1], [], []>} : vector<8x256xbf16>, vector<256x128xbf16>, vector<8x128xf32> -> vector<8x128xf32>
    %c0_33 = arith.constant 0 : index
    %c0_34 = arith.constant 0 : index
    %33 = vector.load %arg9[%c0_33, %c0_34] : memref<1x128xf32, #tpu.memory_space<vmem>>, vector<1x128xf32>
    %34 = vector.broadcast %33 : vector<1x128xf32> to vector<8x128xf32>
    %35 = arith.addf %32, %34 : vector<8x128xf32>
    %cst_35 = arith.constant 0.000000e+00 : f32
    %36 = vector.broadcast %cst_35 : f32 to vector<8x128xf32>
    %37 = arith.maximumf %35, %36 : vector<8x128xf32>
    %38 = arith.truncf %37 : vector<8x128xf32> to vector<8x128xbf16>
    %c0_36 = arith.constant 0 : index
    %c0_37 = arith.constant 0 : index
    %39 = vector.load %arg13[%c0_36, %c0_37] : memref<8x512xbf16, #tpu.memory_space<vmem>>, vector<8x128xbf16>
    tpu.vector_store %arg13[%c0_36, %c0_37], %38 {strides = array<i32>} : memref<8x512xbf16, #tpu.memory_space<vmem>>, vector<8x128xbf16>,
    %c0_38 = arith.constant 0 : index
    %c0_39 = arith.constant 0 : index
    %40 = vector.load %arg13[%c0_38, %c0_39] : memref<8x512xbf16, #tpu.memory_space<vmem>>, vector<8x128xbf16>
    %c0_40 = arith.constant 0 : index
    %c0_41 = arith.constant 0 : index
    %41 = vector.load %arg10[%c0_40, %c0_41] : memref<128x128xbf16, #tpu.memory_space<vmem>>, vector<128x128xbf16>
    %cst_42 = arith.constant dense<0.000000e+00> : vector<8x128xf32>
    %42 = tpu.matmul %40, %41, %cst_42 {dimension_numbers = #tpu.dot_dimension_numbers<[1], [0], [0], [1], [0, 0, 1, 1], [], []>} : vector<8x128xbf16>, vector<128x128xbf16>, vector<8x128xf32> -> vector<8x128xf32>
    %c0_43 = arith.constant 0 : index
    %c0_44 = arith.constant 0 : index
    %43 = vector.load %arg11[%c0_43, %c0_44] : memref<1x128xf32, #tpu.memory_space<vmem>>, vector<1x128xf32>
    %44 = vector.broadcast %43 : vector<1x128xf32> to vector<8x128xf32>
    %45 = arith.addf %42, %44 : vector<8x128xf32>
    %46 = arith.truncf %45 : vector<8x128xf32> to vector<8x128xbf16>
    %c0_45 = arith.constant 0 : index
    %c0_46 = arith.constant 0 : index
    %47 = vector.load %arg12[%c0_45, %c0_46] : memref<8x128xbf16, #tpu.memory_space<vmem>>, vector<8x128xbf16>
    tpu.vector_store %arg12[%c0_45, %c0_46], %46 {strides = array<i32>} : memref<8x128xbf16, #tpu.memory_space<vmem>>, vector<8x128xbf16>,
    return
  }
  func.func @transform_0(%arg0: i32) -> (i32, i32) {
    %c0_i32 = arith.constant 0 : i32
    %c0_i32_0 = arith.constant 0 : i32
    return %arg0, %c0_i32 : i32, i32
  }
  func.func @transform_1(%arg0: i32) -> (i32, i32) {
    %c0_i32 = arith.constant 0 : i32
    %c0_i32_0 = arith.constant 0 : i32
    %c0_i32_1 = arith.constant 0 : i32
    return %c0_i32, %c0_i32_0 : i32, i32
  }
  func.func @transform_2(%arg0: i32) -> (i32, i32) {
    %c0_i32 = arith.constant 0 : i32
    %c0_i32_0 = arith.constant 0 : i32
    %c0_i32_1 = arith.constant 0 : i32
    return %c0_i32, %c0_i32_0 : i32, i32
  }
  func.func @transform_3(%arg0: i32) -> (i32, i32) {
    %c0_i32 = arith.constant 0 : i32
    %c0_i32_0 = arith.constant 0 : i32
    %c0_i32_1 = arith.constant 0 : i32
    return %c0_i32, %c0_i32_0 : i32, i32
  }
  func.func @transform_4(%arg0: i32) -> (i32, i32) {
    %c0_i32 = arith.constant 0 : i32
    %c0_i32_0 = arith.constant 0 : i32
    %c0_i32_1 = arith.constant 0 : i32
    return %c0_i32, %c0_i32_0 : i32, i32
  }
  func.func @transform_5(%arg0: i32) -> (i32, i32) {
    %c0_i32 = arith.constant 0 : i32
    %c0_i32_0 = arith.constant 0 : i32
    %c0_i32_1 = arith.constant 0 : i32
    return %c0_i32, %c0_i32_0 : i32, i32
  }
  func.func @transform_6(%arg0: i32) -> (i32, i32) {
    %c0_i32 = arith.constant 0 : i32
    %c0_i32_0 = arith.constant 0 : i32
    %c0_i32_1 = arith.constant 0 : i32
    return %c0_i32, %c0_i32_0 : i32, i32
  }
  func.func @transform_7(%arg0: i32) -> (i32, i32) {
    %c0_i32 = arith.constant 0 : i32
    %c0_i32_0 = arith.constant 0 : i32
    %c0_i32_1 = arith.constant 0 : i32
    return %c0_i32, %c0_i32_0 : i32, i32
  }
  func.func @transform_8(%arg0: i32) -> (i32, i32) {
    %c0_i32 = arith.constant 0 : i32
    %c0_i32_0 = arith.constant 0 : i32
    %c0_i32_1 = arith.constant 0 : i32
    return %c0_i32, %c0_i32_0 : i32, i32
  }
  func.func @transform_9(%arg0: i32) -> (i32, i32) {
    %c0_i32 = arith.constant 0 : i32
    %c0_i32_0 = arith.constant 0 : i32
    %c0_i32_1 = arith.constant 0 : i32
    return %c0_i32, %c0_i32_0 : i32, i32
  }
  func.func @transform_10(%arg0: i32) -> (i32, i32) {
    %c0_i32 = arith.constant 0 : i32
    %c0_i32_0 = arith.constant 0 : i32
    %c0_i32_1 = arith.constant 0 : i32
    return %c0_i32, %c0_i32_0 : i32, i32
  }
  func.func @transform_11(%arg0: i32) -> (i32, i32) {
    %c0_i32 = arith.constant 0 : i32
    %c0_i32_0 = arith.constant 0 : i32
    return %arg0, %c0_i32 : i32, i32
  }
}

</mosaic_0001>

<bundles_post_ra>
// kernel: tpu_custom_call.1
= control target key start
LH: loop header
LB: loop body
LE: loop exit
PB: predicated region body
PF: predicated region fallthrough
CT: control target
= control target key end

     0   :  { %16 = vsyncpa [#allocation4], 0  ;;  %s5089_s0 = inlined_call_operand.hbm [shape: bf16[8,896], index: 0, kind: input, shape index: {}]   ;;  %s5090_s1 = inlined_call_operand.hbm [shape: bf16[896,512], index: 1, kind: input, shape index: {}]   ;;  %s5091_s2 = inlined_call_operand.hbm [shape: f32[1,512], index: 2, kind: input, shape index: {}]   ;;  %s5092_s3 = inlined_call_operand.hbm [shape: bf16[512,256], index: 3, kind: input, shape index: {}]   ;;  %s5093_s4 = inlined_call_operand.vmem [shape: f32[1,256], index: 4, kind: input, shape index: {}]   ;;  %s5094_s5 = inlined_call_operand.hbm [shape: bf16[256,256], index: 5, kind: input, shape index: {}]   ;;  %s5095_s6 = inlined_call_operand.vmem [shape: f32[1,256], index: 6, kind: input, shape index: {}]   ;;  %s5096_s7 = inlined_call_operand.hbm [shape: bf16[256,128], index: 7, kind: input, shape index: {}]   ;;  %s5097_s8 = inlined_call_operand.vmem [shape: f32[1,128], index: 8, kind: input, shape index: {}]   ;;  %s5098_s9 = inlined_call_operand.hbm [shape: bf16[128,128], index: 9, kind: input, shape index: {}]   ;;  %s5099_s10 = inlined_call_operand.vmem [shape: f32[1,128], index: 10, kind: input, shape index: {}]   ;;  %s5100_s11 = inlined_call_operand.hbm [shape: bf16[8,128], index: 11, kind: output, shape index: {}]  }
   0x1   :  { %17 = vsyncpa [#allocation7], 0 }
   0x2   :  { %18 = vsyncpa [#allocation10], 0 }
   0x3   :  { %19 = vsyncpa [#allocation13], 0  ;;  %s36_s19 = sshll.u32 %s5090_s1, 4  ;;  %s37_s19 = int_to_ptr.hbm [resolvable:$true] %s36_s19 }
   0x4   :  { %20 = vsyncpa [#allocation5], 0  ;;  %s4886_s20 = smov [#allocation6]   ;;  %s60_s24 = sshll.u32 %s5092_s3, 4  ;;  %s61_s24 = int_to_ptr.hbm [resolvable:$true] %s60_s24 }
   0x5   :  { %s38_s21 = sshll.u32 %s4886_s20, 4  ;;  %s4887_s25 = smov 256   ;;  %s39_s21 = int_to_ptr.vmem [resolvable:$true] %s38_s21 }
   0x6   :  { %s4888_s26 = smov 16   ;;  %s4889_s27 = smov [#allocation9]  }
   0x7   :  { %44 = dma.hbm_to_vmem [thread:$0]  %s37_s19, 28672, %s39_s21, [#allocation7], %s4887_s25, %s4887_s25, %s4888_s26  }
   0x8   :  { %s62_s28 = sshll.u32 %s4889_s27, 4  ;;  %s4890_s29 = smov 128   ;;  %s63_s28 = int_to_ptr.vmem [resolvable:$true] %s62_s28 }
   0x9   :  { %s4891_s30 = smov 8   ;;  %s90_s13 = sshll.u32 %s5096_s7, 4  ;;  %s91_s13 = int_to_ptr.hbm [resolvable:$true] %s90_s13 }
   0xa   :  { %68 = dma.hbm_to_vmem [thread:$0]  %s61_s24, 8192, %s63_s28, [#allocation10], %s4890_s29, %s4890_s29, %s4891_s30  }
   0xb   :  { %s4892_s14 = smov [#allocation12]   ;;  %s26_s17 = sshll.u32 %s5089_s0, 4  ;;  %s27_s17 = int_to_ptr.hbm [resolvable:$true] %s26_s17 }
   0xc   :  { %s92_s3 = sshll.u32 %s4892_s14, 4  ;;  %s4893_s18 = smov 64   ;;  %s93_s3 = int_to_ptr.vmem [resolvable:$true] %s92_s3 }
   0xd   :  { %s4894_s19 = smov 4   ;;  %s4895_s20 = smov [#allocation3]  }
   0xe   :  { %98 = dma.hbm_to_vmem [thread:$0]  %s91_s13, 2048, %s93_s3, [#allocation13], %s4893_s18, %s4893_s18, %s4894_s19  }
   0xf   :  { %s28_s21 = sshll.u32 %s4895_s20, 4  ;;  %s50_s24 = sshll.u32 %s5091_s2, 4  ;;  %s29_s21 = int_to_ptr.vmem [resolvable:$true] %s28_s21  ;;  %s51_s24 = int_to_ptr.hbm [resolvable:$true] %s50_s24 }
  0x10   :  { %31 = dma.hbm_to_vmem [thread:$0]  %s27_s17, 448, %s29_s21, [#allocation4]  }
  0x11   :  { %s75_s26 = sshll.u32 %s5094_s5, 4  ;;  %s4896_s27 = smov [#allocation8]   ;;  %s76_s26 = int_to_ptr.hbm [resolvable:$true] %s75_s26 }
  0x12   :  { %s52_s28 = sshll.u32 %s4896_s27, 4  ;;  %s4897_s0 = smov [#allocation11]   ;;  %s53_s28 = int_to_ptr.vmem [resolvable:$true] %s52_s28 }
  0x13   :  { %55 = dma.hbm_to_vmem [thread:$0]  %s51_s24, 64, %s53_s28, [#allocation7]  }
  0x14   :  { %s77_s1 = sshll.u32 %s4897_s0, 4  ;;  %s105_s14 = sshll.u32 %s5098_s9, 4  ;;  %s78_s1 = int_to_ptr.vmem [resolvable:$true] %s77_s1  ;;  %s106_s14 = int_to_ptr.hbm [resolvable:$true] %s105_s14 }
  0x15   :  { %83 = dma.hbm_to_vmem [thread:$0]  %s76_s26, 4096, %s78_s1, [#allocation10], %s4890_s29, %s4890_s29, %s4891_s30  }
  0x16   :  { %s4898_s2 = smov [#allocation14]  }
  0x17   :  { %s107_s3 = sshll.u32 %s4898_s2, 4  ;;  %s108_s3 = int_to_ptr.vmem [resolvable:$true] %s107_s3 }
  0x18   :  { %113 = dma.hbm_to_vmem [thread:$0]  %s106_s14, 1024, %s108_s3, [#allocation13], %s4893_s18, %s4893_s18, %s4894_s19  }
  0x19   :  { %4876 = dma.done.wait [#allocation4], 448  }
  0x1a   :  { %4877 = vsyncadd [#allocation4], 4294966848 }
  0x1b   :  { %4878 = dma.done.wait [#allocation7], 28736  }
  0x1c   :  { %4879 = vsyncadd [#allocation7], 4294938560 }
  0x1d   :  { %4880 = dma.done.wait [#allocation10], 12288  }
  0x1e   :  { %4881 = vsyncadd [#allocation10], 4294955008 }
  0x1f   :  { %4882 = dma.done.wait [#allocation13], 3072  }
  0x20   :  { %4883 = vsyncadd [#allocation13], 4294964224  ;;  %v3062_v0 = vld [vmem:[#allocation6 + $0xe0] sm:$0xf]  ;;  %v4354_v1 = vld [vmem:[#allocation6 + $0xec] sm:$0xf0] }
  0x21   :  { %v3190_v2 = vld [vmem:[#allocation6 + $0x1e0] sm:$0xf]  ;;  %v3063_v3 = vor.u32 %v4354_v1, %v3062_v0  ;;  %v4386_v4 = vld [vmem:[#allocation6 + $0x1ec] sm:$0xf0]  ;;  %s4899_s17 = smov [#allocation15]   ;;  %s2935_s20 = sshll.u32 %s5100_s11, 4  ;;  %s2936_s20 = int_to_ptr.hbm [resolvable:$true] %s2935_s20 }
  0x22   :  { %v3318_v5 = vld [vmem:[#allocation6 + $0x2e0] sm:$0xf]  ;;  %v4418_v6 = vld [vmem:[#allocation6 + $0x2ec] sm:$0xf0]  ;;  %v3191_v7 = vor.u32 %v4386_v4, %v3190_v2  ;;  %s2933_s18 = sshll.u32 %s4899_s17, 4  ;;  %s2934_s18 = int_to_ptr.vmem [resolvable:$true] %s2933_s18 }
  0x23   :  { %v3319_v8 = vor.u32 %v4418_v6, %v3318_v5  ;;  %v3446_v9 = vld [vmem:[#allocation6 + $0x3e0] sm:$0xf]  ;;  %v4450_v10 = vld [vmem:[#allocation6 + $0x3ec] sm:$0xf0]  ;;  %1527 = vmatpush.bf16.msra.mxu0 %v3063_v3 }
  0x24   :  { %v3046_v11 = vld [vmem:[#allocation6 + $0xc0] sm:$0xf]  ;;  %v3447_v12 = vor.u32 %v4450_v10, %v3446_v9  ;;  %v4350_v13 = vld [vmem:[#allocation6 + $0xcc] sm:$0xf0]  ;;  %1540 = vmatpush.bf16.msra.mxu1 %v3191_v7 }
  0x25   :  { %v3174_v14 = vld [vmem:[#allocation6 + $0x1c0] sm:$0xf]  ;;  %v4382_v15 = vld [vmem:[#allocation6 + $0x1cc] sm:$0xf0]  ;;  %1553 = vmatpush.bf16.msra.mxu2 %v3319_v8  ;;  %v3047_v16 = vor.u32 %v4350_v13, %v3046_v11 }
  0x26   :  { %v3175_v17 = vor.u32 %v4382_v15, %v3174_v14  ;;  %v3302_v18 = vld [vmem:[#allocation6 + $0x2c0] sm:$0xf]  ;;  %v4414_v19 = vld [vmem:[#allocation6 + $0x2cc] sm:$0xf0]  ;;  %1566 = vmatpush.bf16.msra.mxu3 %v3447_v12 }
  0x27   :  { %v3430_v20 = vld [vmem:[#allocation6 + $0x3c0] sm:$0xf]  ;;  %v3303_v21 = vor.u32 %v4414_v19, %v3302_v18  ;;  %v4446_v22 = vld [vmem:[#allocation6 + $0x3cc] sm:$0xf0]  ;;  %1528 = vmatpush.bf16.msra.mxu0 %v3047_v16 }
  0x28   :  { %v3030_v23 = vld [vmem:[#allocation6 + $0xa0] sm:$0xf]  ;;  %v4346_v24 = vld [vmem:[#allocation6 + $0xac] sm:$0xf0]  ;;  %v3431_v25 = vor.u32 %v4446_v22, %v3430_v20  ;;  %1541 = vmatpush.bf16.msra.mxu1 %v3175_v17 }
  0x29   :  { %v3158_v26 = vld [vmem:[#allocation6 + $0x1a0] sm:$0xf]  ;;  %v4378_v27 = vld [vmem:[#allocation6 + $0x1ac] sm:$0xf0]  ;;  %v3031_v29 = vor.u32 %v4346_v24, %v3030_v23  ;;  %1554 = vmatpush.bf16.msra.mxu2 %v3303_v21 }
  0x2a   :  { %v3286_v28 = vld [vmem:[#allocation6 + $0x2a0] sm:$0xf]  ;;  %v4410_v30 = vld [vmem:[#allocation6 + $0x2ac] sm:$0xf0]  ;;  %v3159_v33 = vor.u32 %v4378_v27, %v3158_v26  ;;  %1567 = vmatpush.bf16.msra.mxu3 %v3431_v25 }
  0x2b   :  { %v3414_v31 = vld [vmem:[#allocation6 + $0x3a0] sm:$0xf]  ;;  %v4442_v32 = vld [vmem:[#allocation6 + $0x3ac] sm:$0xf0]  ;;  %v3287_v34 = vor.u32 %v4410_v30, %v3286_v28  ;;  %1529 = vmatpush.bf16.msra.mxu0 %v3031_v29 }
  0x2c   :  { %v3014_v35 = vld [vmem:[#allocation6 + $0x80] sm:$0xf]  ;;  %v4342_v36 = vld [vmem:[#allocation6 + $0x8c] sm:$0xf0]  ;;  %v3415_v38 = vor.u32 %v4442_v32, %v3414_v31  ;;  %1542 = vmatpush.bf16.msra.mxu1 %v3159_v33 }
  0x2d   :  { %v3142_v37 = vld [vmem:[#allocation6 + $0x180] sm:$0xf]  ;;  %v4374_v39 = vld [vmem:[#allocation6 + $0x18c] sm:$0xf0]  ;;  %v3015_v44 = vor.u32 %v4342_v36, %v3014_v35  ;;  %1555 = vmatpush.bf16.msra.mxu2 %v3287_v34 }
  0x2e   :  { %v3270_v40 = vld [vmem:[#allocation6 + $0x280] sm:$0xf]  ;;  %v4406_v41 = vld [vmem:[#allocation6 + $0x28c] sm:$0xf0]  ;;  %v3143_v45 = vor.u32 %v4374_v39, %v3142_v37  ;;  %1568 = vmatpush.bf16.msra.mxu3 %v3415_v38  ;;  %v4352_v37 = vld [vmem:[#allocation6 + $0xe4] sm:$0xf] }
  0x2f   :  { %v3398_v42 = vld [vmem:[#allocation6 + $0x380] sm:$0xf]  ;;  %v4438_v43 = vld [vmem:[#allocation6 + $0x38c] sm:$0xf0]  ;;  %v3271_v46 = vor.u32 %v4406_v41, %v3270_v40  ;;  %1530 = vmatpush.bf16.msra.mxu0 %v3015_v44  ;;  %v3064_v38 = vld [vmem:[#allocation6 + $0xf0] sm:$0xf0] }
  0x30   :  { %v2998_v47 = vld [vmem:[#allocation6 + $0x60] sm:$0xf]  ;;  %v4338_v48 = vld [vmem:[#allocation6 + $0x6c] sm:$0xf0]  ;;  %v3399_v50 = vor.u32 %v4438_v43, %v3398_v42  ;;  %1543 = vmatpush.bf16.msra.mxu1 %v3143_v45 }
  0x31   :  { %v3126_v49 = vld [vmem:[#allocation6 + $0x160] sm:$0xf]  ;;  %v4370_v51 = vld [vmem:[#allocation6 + $0x16c] sm:$0xf0]  ;;  %v2999_v56 = vor.u32 %v4338_v48, %v2998_v47  ;;  %1556 = vmatpush.bf16.msra.mxu2 %v3271_v46  ;;  %v3067_v46 = vor.u32 %v4352_v37, %v3064_v38 }
  0x32   :  { %v3254_v52 = vld [vmem:[#allocation6 + $0x260] sm:$0xf]  ;;  %v4402_v53 = vld [vmem:[#allocation6 + $0x26c] sm:$0xf0]  ;;  %v3127_v57 = vor.u32 %v4370_v51, %v3126_v49  ;;  %1569 = vmatpush.bf16.msra.mxu3 %v3399_v50  ;;  %v4348_v50 = vld [vmem:[#allocation6 + $0xc4] sm:$0xf] }
  0x33   :  { %v3382_v54 = vld [vmem:[#allocation6 + $0x360] sm:$0xf]  ;;  %v4434_v55 = vld [vmem:[#allocation6 + $0x36c] sm:$0xf0]  ;;  %v3255_v58 = vor.u32 %v4402_v53, %v3254_v52  ;;  %1531 = vmatpush.bf16.msra.mxu0 %v2999_v56  ;;  %v3048_v51 = vld [vmem:[#allocation6 + $0xd0] sm:$0xf0] }
  0x34   :  { %v2982_v59 = vld [vmem:[#allocation6 + $0x40] sm:$0xf]  ;;  %v4334_v60 = vld [vmem:[#allocation6 + $0x4c] sm:$0xf0]  ;;  %v3383_v62 = vor.u32 %v4434_v55, %v3382_v54  ;;  %1544 = vmatpush.bf16.msra.mxu1 %v3127_v57 }
  0x35   :  { %v3110_v61 = vld [vmem:[#allocation6 + $0x140] sm:$0xf]  ;;  %v4366_v63 = vld [vmem:[#allocation6 + $0x14c] sm:$0xf0]  ;;  %v2983_v4 = vor.u32 %v4334_v60, %v2982_v59  ;;  %1557 = vmatpush.bf16.msra.mxu2 %v3255_v58  ;;  %v3051_v59 = vor.u32 %v4348_v50, %v3048_v51 }
  0x36   :  { %v3238_v0 = vld [vmem:[#allocation6 + $0x240] sm:$0xf]  ;;  %v4398_v1 = vld [vmem:[#allocation6 + $0x24c] sm:$0xf0]  ;;  %v3111_v5 = vor.u32 %v4366_v63, %v3110_v61  ;;  %1570 = vmatpush.bf16.msra.mxu3 %v3383_v62  ;;  %v4344_v62 = vld [vmem:[#allocation6 + $0xa4] sm:$0xf] }
  0x37   :  { %v3366_v2 = vld [vmem:[#allocation6 + $0x340] sm:$0xf]  ;;  %v4430_v3 = vld [vmem:[#allocation6 + $0x34c] sm:$0xf0]  ;;  %v3239_v6 = vor.u32 %v4398_v1, %v3238_v0  ;;  %1532 = vmatpush.bf16.msra.mxu0 %v2983_v4  ;;  %v3032_v63 = vld [vmem:[#allocation6 + $0xb0] sm:$0xf0] }
  0x38   :  { %v2966_v7 = vld [vmem:[#allocation6 + $0x20] sm:$0xf]  ;;  %v4330_v8 = vld [vmem:[#allocation6 + $0x2c] sm:$0xf0]  ;;  %v3367_v10 = vor.u32 %v4430_v3, %v3366_v2  ;;  %1545 = vmatpush.bf16.msra.mxu1 %v3111_v5  ;;  %v144_v3 = vld [vmem:[#allocation3] sm:$0xff] }
  0x39   :  { %v3094_v9 = vld [vmem:[#allocation6 + $0x120] sm:$0xf]  ;;  %v4362_v11 = vld [vmem:[#allocation6 + $0x12c] sm:$0xf0]  ;;  %v2967_v16 = vor.u32 %v4330_v8, %v2966_v7  ;;  %1558 = vmatpush.bf16.msra.mxu2 %v3239_v6 }
  0x3a   :  { %v3222_v12 = vld [vmem:[#allocation6 + $0x220] sm:$0xf]  ;;  %v4394_v13 = vld [vmem:[#allocation6 + $0x22c] sm:$0xf0]  ;;  %v3095_v19 = vor.u32 %v4362_v11, %v3094_v9  ;;  %1571 = vmatpush.bf16.msra.mxu3 %v3367_v10  ;;  %v386_v9 = vunpack.c.l.b16 %v144_v3  ;;  %v3035_v11 = vor.u32 %v4344_v62, %v3032_v63 }
  0x3b   :  { %v3350_v14 = vld [vmem:[#allocation6 + $0x320] sm:$0xf]  ;;  %v4426_v15 = vld [vmem:[#allocation6 + $0x32c] sm:$0xf0]  ;;  %v3223_v20 = vor.u32 %v4394_v13, %v3222_v12  ;;  %1533 = vmatpush.bf16.msra.mxu0 %v2967_v16  ;;  %v4340_v16 = vld [vmem:[#allocation6 + $0x84] sm:$0xf] }
  0x3c   :  { %v2950_v17 = vld [vmem:[#allocation6] sm:$0xf]  ;;  %v4326_v18 = vld [vmem:[#allocation6 + $0xc] sm:$0xf0]  ;;  %v3351_v24 = vor.u32 %v4426_v15, %v3350_v14  ;;  %1546 = vmatpush.bf16.msra.mxu1 %v3095_v19  ;;  %v387_v15 = vunpack.c.h.b16 %v144_v3  ;;  %v4989_v19 = vpack.c.b16 %v386_v9, %v386_v9  ;;  %v147_v3 = vld [vmem:[#allocation3 + $0x18] sm:$0xf] }
  0x3d   :  { %v3078_v21 = vld [vmem:[#allocation6 + $0x100] sm:$0xf]  ;;  %v4358_v22 = vld [vmem:[#allocation6 + $0x10c] sm:$0xf0]  ;;  %v2951_v31 = vor.u32 %v4326_v18, %v2950_v17  ;;  %1559 = vmatpush.bf16.msra.mxu2 %v3223_v20  ;;  %v3016_v17 = vld [vmem:[#allocation6 + $0x90] sm:$0xf0] }
  0x3e   :  { %v3206_v23 = vld [vmem:[#allocation6 + $0x200] sm:$0xf]  ;;  %v4390_v25 = vld [vmem:[#allocation6 + $0x20c] sm:$0xf0]  ;;  %v3079_v35 = vor.u32 %v4358_v22, %v3078_v21  ;;  %1572 = vmatpush.bf16.msra.mxu3 %v3351_v24  ;;  %v4993_v22 = vpack.c.b16 %v387_v15, %v387_v15  ;;  %v3192_v9 = vld [vmem:[#allocation6 + $0x1f0] sm:$0xf0]  ;;  %v392_v15 = vunpack.c.l.b16 %v147_v3 }
  0x3f   :  { %v3334_v26 = vld [vmem:[#allocation6 + $0x300] sm:$0xf]  ;;  %v4422_v27 = vld [vmem:[#allocation6 + $0x30c] sm:$0xf0]  ;;  %v3207_v36 = vor.u32 %v4390_v25, %v3206_v23  ;;  %1534 = vmatpush.bf16.msra.mxu0 %v2951_v31 }
  0x40   :  { %v3574_v28 = vld [vmem:[#allocation6 + $0x4e0] sm:$0xf]  ;;  %v4482_v29 = vld [vmem:[#allocation6 + $0x4ec] sm:$0xf0]  ;;  %v3335_v39 = vor.u32 %v4422_v27, %v3334_v26  ;;  %1547 = vmatpush.bf16.msra.mxu1 %v3079_v35 }
  0x41   :  { %v3702_v30 = vld [vmem:[#allocation6 + $0x5e0] sm:$0xf]  ;;  %v4514_v32 = vld [vmem:[#allocation6 + $0x5ec] sm:$0xf0]  ;;  %v3575_v40 = vor.u32 %v4482_v29, %v3574_v28  ;;  %1560 = vmatpush.bf16.msra.mxu2 %v3207_v36  ;;  %v3019_v28 = vor.u32 %v4340_v16, %v3016_v17 }
  0x42   :  { %v3830_v33 = vld [vmem:[#allocation6 + $0x6e0] sm:$0xf]  ;;  %v4546_v34 = vld [vmem:[#allocation6 + $0x6ec] sm:$0xf0]  ;;  %v3703_v41 = vor.u32 %v4514_v32, %v3702_v30  ;;  %1573 = vmatpush.bf16.msra.mxu3 %v3335_v39  ;;  %v4336_v32 = vld [vmem:[#allocation6 + $0x64] sm:$0xf]  ;;  %1535 = vmatmul.bf16.vlgmr.msra.gmra.mxu0 %v4989_v19 }
  0x43   :  { %v3831_v42 = vor.u32 %v4546_v34, %v3830_v33  ;;  %v3558_v43 = vld [vmem:[#allocation6 + $0x4c0] sm:$0xf]  ;;  %v4478_v44 = vld [vmem:[#allocation6 + $0x4cc] sm:$0xf0]  ;;  %1579 = vmatpush.bf16.msrb.mxu0 %v3575_v40  ;;  %v3000_v33 = vld [vmem:[#allocation6 + $0x70] sm:$0xf0]  ;;  %1548 = vmatmul.bf16.vlgmr.msra.gmra.mxu1 %v4993_v22 }
  0x44   :  { %v3686_v45 = vld [vmem:[#allocation6 + $0x5c0] sm:$0xf]  ;;  %v4510_v47 = vld [vmem:[#allocation6 + $0x5cc] sm:$0xf0]  ;;  %v3559_v52 = vor.u32 %v4478_v44, %v3558_v43  ;;  %1592 = vmatpush.bf16.msrb.mxu1 %v3703_v41  ;;  %v3003_v40 = vor.u32 %v4336_v32, %v3000_v33  ;;  %v4332_v44 = vld [vmem:[#allocation6 + $0x44] sm:$0xf] }
  0x45   :  { %v3814_v48 = vld [vmem:[#allocation6 + $0x6c0] sm:$0xf]  ;;  %v4542_v49 = vld [vmem:[#allocation6 + $0x6cc] sm:$0xf0]  ;;  %1605 = vmatpush.bf16.msrb.mxu2 %v3831_v42  ;;  %v3687_v54 = vor.u32 %v4510_v47, %v3686_v45  ;;  %v2984_v45 = vld [vmem:[#allocation6 + $0x50] sm:$0xf0] }
  0x46   :  { %v3542_v53 = vld [vmem:[#allocation6 + $0x4a0] sm:$0xf]  ;;  %v3815_v55 = vor.u32 %v4542_v49, %v3814_v48  ;;  %v4474_v56 = vld [vmem:[#allocation6 + $0x4ac] sm:$0xf0]  ;;  %1618 = vmatpush.bf16.msrb.mxu3 %v3067_v46  ;;  %v4412_v32 = vld [vmem:[#allocation6 + $0x2c4] sm:$0xf] }
  0x47   :  { %v3670_v57 = vld [vmem:[#allocation6 + $0x5a0] sm:$0xf]  ;;  %v4506_v58 = vld [vmem:[#allocation6 + $0x5ac] sm:$0xf0]  ;;  %1580 = vmatpush.bf16.msrb.mxu0 %v3559_v52  ;;  %v3543_v0 = vor.u32 %v4474_v56, %v3542_v53  ;;  %v2987_v52 = vor.u32 %v4332_v44, %v2984_v45  ;;  %v4328_v56 = vld [vmem:[#allocation6 + $0x24] sm:$0xf] }
  0x48   :  { %v3798_v60 = vld [vmem:[#allocation6 + $0x6a0] sm:$0xf]  ;;  %v4538_v61 = vld [vmem:[#allocation6 + $0x6ac] sm:$0xf0]  ;;  %v3671_v1 = vor.u32 %v4506_v58, %v3670_v57  ;;  %1593 = vmatpush.bf16.msrb.mxu1 %v3687_v54  ;;  %v2968_v57 = vld [vmem:[#allocation6 + $0x30] sm:$0xf0] }
  0x49   :  { %v145_v2 = vld [vmem:[#allocation3 + $0x8] sm:$0xff]  ;;  %1606 = vmatpush.bf16.msrb.mxu2 %v3815_v55  ;;  %v3799_v4 = vor.u32 %v4538_v61, %v3798_v60  ;;  %v3526_v5 = vld [vmem:[#allocation6 + $0x480] sm:$0xf]  ;;  %v4376_v45 = vld [vmem:[#allocation6 + $0x1a4] sm:$0xf] }
  0x4a   :  { %v4470_v6 = vld [vmem:[#allocation6 + $0x48c] sm:$0xf0]  ;;  %v3654_v7 = vld [vmem:[#allocation6 + $0x580] sm:$0xf]  ;;  %v388_v8 = vunpack.c.l.b16 %v145_v2  ;;  %v389_v10 = vunpack.c.h.b16 %v145_v2  ;;  %1619 = vmatpush.bf16.msrb.mxu3 %v3051_v59 }
  0x4b   :  { %v4502_v12 = vld [vmem:[#allocation6 + $0x58c] sm:$0xf0]  ;;  %v3782_v13 = vld [vmem:[#allocation6 + $0x680] sm:$0xf]  ;;  %1581 = vmatpush.bf16.msrb.mxu0 %v3543_v0  ;;  %v3527_v21 = vor.u32 %v4470_v6, %v3526_v5  ;;  %v4324_v5 = vld [vmem:[#allocation6 + $0x4] sm:$0xf] }
  0x4c   :  { %v4534_v14 = vld [vmem:[#allocation6 + $0x68c] sm:$0xf0]  ;;  %v4987_v18 = vpack.c.b16 %v388_v8, %v388_v8  ;;  %v4991_v20 = vpack.c.b16 %v389_v10, %v389_v10  ;;  %1594 = vmatpush.bf16.msrb.mxu1 %v3671_v1  ;;  %v3655_v23 = vor.u32 %v4502_v12, %v3654_v7  ;;  %v3510_v25 = vld [vmem:[#allocation6 + $0x460] sm:$0xf]  ;;  %v2952_v6 = vld [vmem:[#allocation6 + $0x10] sm:$0xf0] }
  0x4d   :  { %1607 = vmatpush.bf16.msrb.mxu2 %v3799_v4  ;;  %v3783_v24 = vor.u32 %v4534_v14, %v3782_v13  ;;  %v4466_v26 = vld [vmem:[#allocation6 + $0x46c] sm:$0xf0]  ;;  %v3638_v27 = vld [vmem:[#allocation6 + $0x560] sm:$0xf]  ;;  %v2971_v4 = vor.u32 %v4328_v56, %v2968_v57  ;;  %v146_v7 = vld [vmem:[#allocation3 + $0x10] sm:$0xff] }
  0x4e   :  { %1620 = vmatpush.bf16.msrb.mxu3 %v3035_v11  ;;  %v4498_v29 = vld [vmem:[#allocation6 + $0x56c] sm:$0xf0]  ;;  %v3766_v30 = vld [vmem:[#allocation6 + $0x660] sm:$0xf]  ;;  %1561 = vmatmul.bf16.vlgmr.msra.gmra.mxu2 %v4987_v18  ;;  %v3511_v34 = vor.u32 %v4466_v26, %v3510_v25  ;;  %v4384_v8 = vld [vmem:[#allocation6 + $0x1e4] sm:$0xf]  ;;  %v391_v25 = vunpack.c.h.b16 %v146_v7  ;;  %v2955_v26 = vor.u32 %v4324_v5, %v2952_v6 }
  0x4f   :  { %v4530_v31 = vld [vmem:[#allocation6 + $0x66c] sm:$0xf0]  ;;  %1574 = vmatmul.bf16.vlgmr.msra.gmra.mxu3 %v4991_v20  ;;  %1582 = vmatpush.bf16.msrb.mxu0 %v3527_v21  ;;  %v3639_v35 = vor.u32 %v4498_v29, %v3638_v27  ;;  %v3494_v37 = vld [vmem:[#allocation6 + $0x440] sm:$0xf]  ;;  %v4416_v10 = vld [vmem:[#allocation6 + $0x2e4] sm:$0xf]  ;;  %v3195_v27 = vor.u32 %v4384_v8, %v3192_v9 }
  0x50   :  { %1595 = vmatpush.bf16.msrb.mxu1 %v3655_v23  ;;  %v3767_v36 = vor.u32 %v4530_v31, %v3766_v30  ;;  %v4462_v38 = vld [vmem:[#allocation6 + $0x44c] sm:$0xf0]  ;;  %v3622_v39 = vld [vmem:[#allocation6 + $0x540] sm:$0xf]  ;;  %v3320_v12 = vld [vmem:[#allocation6 + $0x2f0] sm:$0xf0] }
  0x51   :  { %1608 = vmatpush.bf16.msrb.mxu2 %v3783_v24  ;;  %v4494_v41 = vld [vmem:[#allocation6 + $0x54c] sm:$0xf0]  ;;  %v3750_v42 = vld [vmem:[#allocation6 + $0x640] sm:$0xf]  ;;  %v3495_v46 = vor.u32 %v4462_v38, %v3494_v37  ;;  %v4448_v13 = vld [vmem:[#allocation6 + $0x3e4] sm:$0xf]  ;;  %v390_v24 = vunpack.c.l.b16 %v146_v7  ;;  %v4999_v37 = vpack.c.b16 %v392_v15, %v392_v15 }
  0x52   :  { %1621 = vmatpush.bf16.msrb.mxu3 %v3019_v28  ;;  %v4526_v43 = vld [vmem:[#allocation6 + $0x64c] sm:$0xf0]  ;;  %v3623_v47 = vor.u32 %v4494_v41, %v3622_v39  ;;  %v3478_v49 = vld [vmem:[#allocation6 + $0x420] sm:$0xf]  ;;  %v3448_v14 = vld [vmem:[#allocation6 + $0x3f0] sm:$0xf0]  ;;  %v3323_v28 = vor.u32 %v4416_v10, %v3320_v12  ;;  %v5003_v41 = vpack.c.b16 %v391_v25, %v391_v25 }
  0x53   :  { %1583 = vmatpush.bf16.msrb.mxu0 %v3511_v34  ;;  %v3751_v48 = vor.u32 %v4526_v43, %v3750_v42  ;;  %v4458_v50 = vld [vmem:[#allocation6 + $0x42c] sm:$0xf0]  ;;  %v3606_v51 = vld [vmem:[#allocation6 + $0x520] sm:$0xf]  ;;  %v4480_v21 = vld [vmem:[#allocation6 + $0x4e4] sm:$0xf]  ;;  %v3451_v29 = vor.u32 %v4448_v13, %v3448_v14 }
  0x54   :  { %1596 = vmatpush.bf16.msrb.mxu1 %v3639_v35  ;;  %v4490_v53 = vld [vmem:[#allocation6 + $0x52c] sm:$0xf0]  ;;  %v3734_v54 = vld [vmem:[#allocation6 + $0x620] sm:$0xf]  ;;  %v3479_v59 = vor.u32 %v4458_v50, %v3478_v49  ;;  %v3576_v23 = vld [vmem:[#allocation6 + $0x4f0] sm:$0xf0] }
  0x55   :  { %1609 = vmatpush.bf16.msrb.mxu2 %v3767_v36  ;;  %v4522_v55 = vld [vmem:[#allocation6 + $0x62c] sm:$0xf0]  ;;  %v3462_v58 = vld [vmem:[#allocation6 + $0x400] sm:$0xf]  ;;  %v3607_v63 = vor.u32 %v4490_v53, %v3606_v51  ;;  %v4380_v30 = vld [vmem:[#allocation6 + $0x1c4] sm:$0xf]  ;;  %v3579_v33 = vor.u32 %v4480_v21, %v3576_v23 }
  0x56   :  { %1622 = vmatpush.bf16.msrb.mxu3 %v3003_v40  ;;  %v4454_v60 = vld [vmem:[#allocation6 + $0x40c] sm:$0xf0]  ;;  %v3590_v61 = vld [vmem:[#allocation6 + $0x500] sm:$0xf]  ;;  %v3735_v0 = vor.u32 %v4522_v55, %v3734_v54  ;;  %v3176_v31 = vld [vmem:[#allocation6 + $0x1d0] sm:$0xf0]  ;;  %v5001_v40 = vpack.c.b16 %v390_v24, %v390_v24 }
  0x57   :  { %1584 = vmatpush.bf16.msrb.mxu0 %v3495_v46  ;;  %v4486_v62 = vld [vmem:[#allocation6 + $0x50c] sm:$0xf0]  ;;  %v3718_v1 = vld [vmem:[#allocation6 + $0x600] sm:$0xf]  ;;  %v3463_v11 = vor.u32 %v4454_v60, %v3462_v58  ;;  %v3304_v34 = vld [vmem:[#allocation6 + $0x2d0] sm:$0xf0]  ;;  %v3179_v42 = vor.u32 %v4380_v30, %v3176_v31 }
  0x58   :  { %1597 = vmatpush.bf16.msrb.mxu1 %v3623_v47  ;;  %v4518_v2 = vld [vmem:[#allocation6 + $0x60c] sm:$0xf0]  ;;  %v3591_v16 = vor.u32 %v4486_v62, %v3590_v61  ;;  %v4444_v35 = vld [vmem:[#allocation6 + $0x3c4] sm:$0xf]  ;;  %v3432_v36 = vld [vmem:[#allocation6 + $0x3d0] sm:$0xf0]  ;;  %v3307_v43 = vor.u32 %v4412_v32, %v3304_v34 }
  0x59   :  { %1610 = vmatpush.bf16.msrb.mxu2 %v3751_v48  ;;  %v3719_v17 = vor.u32 %v4518_v2, %v3718_v1  ;;  %v4476_v38 = vld [vmem:[#allocation6 + $0x4c4] sm:$0xf]  ;;  %v3560_v39 = vld [vmem:[#allocation6 + $0x4d0] sm:$0xf0]  ;;  %v3435_v44 = vor.u32 %v4444_v35, %v3432_v36 }
  0x5a   :  { %1623 = vmatpush.bf16.msrb.mxu3 %v2987_v52  ;;  %v3160_v46 = vld [vmem:[#allocation6 + $0x1b0] sm:$0xf0]  ;;  %v4408_v47 = vld [vmem:[#allocation6 + $0x2a4] sm:$0xf]  ;;  %v3563_v48 = vor.u32 %v4476_v38, %v3560_v39 }
  0x5b   :  { %1585 = vmatpush.bf16.msrb.mxu0 %v3479_v59  ;;  %v3288_v49 = vld [vmem:[#allocation6 + $0x2b0] sm:$0xf0]  ;;  %v4440_v50 = vld [vmem:[#allocation6 + $0x3a4] sm:$0xf]  ;;  %v3163_v54 = vor.u32 %v4376_v45, %v3160_v46 }
  0x5c   :  { %1598 = vmatpush.bf16.msrb.mxu1 %v3607_v63  ;;  %v3416_v51 = vld [vmem:[#allocation6 + $0x3b0] sm:$0xf0]  ;;  %v4472_v52 = vld [vmem:[#allocation6 + $0x4a4] sm:$0xf]  ;;  %v3291_v55 = vor.u32 %v4408_v47, %v3288_v49 }
  0x5d   :  { %1611 = vmatpush.bf16.msrb.mxu2 %v3735_v0  ;;  %v3544_v53 = vld [vmem:[#allocation6 + $0x4b0] sm:$0xf0]  ;;  %v3419_v56 = vor.u32 %v4440_v50, %v3416_v51  ;;  %v4372_v57 = vld [vmem:[#allocation6 + $0x184] sm:$0xf] }
  0x5e   :  { %1624 = vmatpush.bf16.msrb.mxu3 %v2971_v4  ;;  %v3144_v58 = vld [vmem:[#allocation6 + $0x190] sm:$0xf0]  ;;  %v4404_v59 = vld [vmem:[#allocation6 + $0x284] sm:$0xf]  ;;  %v3547_v60 = vor.u32 %v4472_v52, %v3544_v53 }
  0x5f   :  { %1586 = vmatpush.bf16.msrb.mxu0 %v3463_v11  ;;  %v3272_v61 = vld [vmem:[#allocation6 + $0x290] sm:$0xf0]  ;;  %v4436_v62 = vld [vmem:[#allocation6 + $0x384] sm:$0xf]  ;;  %v3147_v2 = vor.u32 %v4372_v57, %v3144_v58 }
  0x60   :  { %1599 = vmatpush.bf16.msrb.mxu1 %v3591_v16  ;;  %v3400_v63 = vld [vmem:[#allocation6 + $0x390] sm:$0xf0]  ;;  %v4468_v0 = vld [vmem:[#allocation6 + $0x484] sm:$0xf]  ;;  %v3275_v3 = vor.u32 %v4404_v59, %v3272_v61 }
  0x61   :  { %1612 = vmatpush.bf16.msrb.mxu2 %v3719_v17  ;;  %v3528_v1 = vld [vmem:[#allocation6 + $0x490] sm:$0xf0]  ;;  %v3403_v4 = vor.u32 %v4436_v62, %v3400_v63  ;;  %v4368_v5 = vld [vmem:[#allocation6 + $0x164] sm:$0xf]  ;;  %v3070_v62 = vld [vmem:[#allocation6 + $0xe8] sm:$0xf] }
  0x62   :  { %1625 = vmatpush.bf16.msrb.mxu3 %v2955_v26  ;;  %1587 = vmatmul.bf16.vlgmr.msrb.gmra.mxu0 %v5001_v40  ;;  %v3128_v6 = vld [vmem:[#allocation6 + $0x170] sm:$0xf0]  ;;  %v4400_v7 = vld [vmem:[#allocation6 + $0x264] sm:$0xf]  ;;  %v3531_v8 = vor.u32 %v4468_v0, %v3528_v1  ;;  %v4355_v63 = vld [vmem:[#allocation6 + $0xf4] sm:$0xf0] }
  0x63   :  { %1631 = vmatpush.bf16.msra.mxu0 %v3195_v27  ;;  %1600 = vmatmul.bf16.vlgmr.msrb.gmra.mxu1 %v5003_v41  ;;  %v3256_v9 = vld [vmem:[#allocation6 + $0x270] sm:$0xf0]  ;;  %v4432_v10 = vld [vmem:[#allocation6 + $0x364] sm:$0xf]  ;;  %v3131_v14 = vor.u32 %v4368_v5, %v3128_v6 }
  0x64   :  { %1644 = vmatpush.bf16.msra.mxu1 %v3323_v28  ;;  %1613 = vmatmul.bf16.vlgmr.msrb.gmra.mxu2 %v4999_v37  ;;  %v3384_v11 = vld [vmem:[#allocation6 + $0x370] sm:$0xf0]  ;;  %v4464_v12 = vld [vmem:[#allocation6 + $0x464] sm:$0xf]  ;;  %v3259_v15 = vor.u32 %v4400_v7, %v3256_v9  ;;  %v3071_v7 = vor.u32 %v4355_v63, %v3070_v62 }
  0x65   :  { %1657 = vmatpush.bf16.msra.mxu2 %v3451_v29  ;;  %1626 = vmatmul.bf16.vlgmr.msrb.gmra.mxu3 %v4989_v19  ;;  %v3512_v13 = vld [vmem:[#allocation6 + $0x470] sm:$0xf0]  ;;  %v3387_v16 = vor.u32 %v4432_v10, %v3384_v11  ;;  %v4364_v17 = vld [vmem:[#allocation6 + $0x144] sm:$0xf] }
  0x66   :  { %1670 = vmatpush.bf16.msra.mxu3 %v3579_v33  ;;  %v3112_v21 = vld [vmem:[#allocation6 + $0x150] sm:$0xf0]  ;;  %v4396_v23 = vld [vmem:[#allocation6 + $0x244] sm:$0xf]  ;;  %v3515_v24 = vor.u32 %v4464_v12, %v3512_v13  ;;  %v3054_v13 = vld [vmem:[#allocation6 + $0xc8] sm:$0xf] }
  0x67   :  { %1632 = vmatpush.bf16.msra.mxu0 %v3179_v42  ;;  %v3240_v25 = vld [vmem:[#allocation6 + $0x250] sm:$0xf0]  ;;  %v4428_v26 = vld [vmem:[#allocation6 + $0x344] sm:$0xf]  ;;  %v3115_v30 = vor.u32 %v4364_v17, %v3112_v21 }
  0x68   :  { %1645 = vmatpush.bf16.msra.mxu1 %v3307_v43  ;;  %v3368_v27 = vld [vmem:[#allocation6 + $0x350] sm:$0xf0]  ;;  %v4460_v28 = vld [vmem:[#allocation6 + $0x444] sm:$0xf]  ;;  %v3243_v31 = vor.u32 %v4396_v23, %v3240_v25 }
  0x69   :  { %1658 = vmatpush.bf16.msra.mxu2 %v3435_v44  ;;  %v3496_v29 = vld [vmem:[#allocation6 + $0x450] sm:$0xf0]  ;;  %v3371_v32 = vor.u32 %v4428_v26, %v3368_v27  ;;  %v4360_v33 = vld [vmem:[#allocation6 + $0x124] sm:$0xf] }
  0x6a   :  { %1671 = vmatpush.bf16.msra.mxu3 %v3563_v48  ;;  %v3096_v34 = vld [vmem:[#allocation6 + $0x130] sm:$0xf0]  ;;  %v4392_v35 = vld [vmem:[#allocation6 + $0x224] sm:$0xf]  ;;  %v3499_v36 = vor.u32 %v4460_v28, %v3496_v29  ;;  %v3038_v29 = vld [vmem:[#allocation6 + $0xa8] sm:$0xf] }
  0x6b   :  { %1633 = vmatpush.bf16.msra.mxu0 %v3163_v54  ;;  %v3224_v38 = vld [vmem:[#allocation6 + $0x230] sm:$0xf0]  ;;  %v4424_v39 = vld [vmem:[#allocation6 + $0x324] sm:$0xf]  ;;  %v3099_v45 = vor.u32 %v4360_v33, %v3096_v34 }
  0x6c   :  { %1646 = vmatpush.bf16.msra.mxu1 %v3291_v55  ;;  %v3352_v42 = vld [vmem:[#allocation6 + $0x330] sm:$0xf0]  ;;  %v4456_v43 = vld [vmem:[#allocation6 + $0x424] sm:$0xf]  ;;  %v3227_v48 = vor.u32 %v4392_v35, %v3224_v38 }
  0x6d   :  { %1659 = vmatpush.bf16.msra.mxu2 %v3419_v56  ;;  %v3480_v44 = vld [vmem:[#allocation6 + $0x430] sm:$0xf0]  ;;  %v4356_v46 = vld [vmem:[#allocation6 + $0x104] sm:$0xf]  ;;  %v3355_v49 = vor.u32 %v4424_v39, %v3352_v42 }
  0x6e   :  { %1672 = vmatpush.bf16.msra.mxu3 %v3547_v60  ;;  %v3080_v47 = vld [vmem:[#allocation6 + $0x110] sm:$0xf0]  ;;  %v4388_v50 = vld [vmem:[#allocation6 + $0x204] sm:$0xf]  ;;  %v3483_v53 = vor.u32 %v4456_v43, %v3480_v44  ;;  %v3022_v44 = vld [vmem:[#allocation6 + $0x88] sm:$0xf] }
  0x6f   :  { %1634 = vmatpush.bf16.msra.mxu0 %v3147_v2  ;;  %v3208_v51 = vld [vmem:[#allocation6 + $0x210] sm:$0xf0]  ;;  %v4420_v52 = vld [vmem:[#allocation6 + $0x304] sm:$0xf]  ;;  %v3083_v60 = vor.u32 %v4356_v46, %v3080_v47  ;;  %v3198_v2 = vld [vmem:[#allocation6 + $0x1e8] sm:$0xf] }
  0x70   :  { %1647 = vmatpush.bf16.msra.mxu1 %v3275_v3  ;;  %v3336_v54 = vld [vmem:[#allocation6 + $0x310] sm:$0xf0]  ;;  %v4452_v55 = vld [vmem:[#allocation6 + $0x404] sm:$0xf]  ;;  %v3211_v0 = vor.u32 %v4388_v50, %v3208_v51  ;;  %v4387_v3 = vld [vmem:[#allocation6 + $0x1f4] sm:$0xf0] }
  0x71   :  { %1660 = vmatpush.bf16.msra.mxu2 %v3403_v4  ;;  %v3464_v56 = vld [vmem:[#allocation6 + $0x410] sm:$0xf0]  ;;  %v4512_v57 = vld [vmem:[#allocation6 + $0x5e4] sm:$0xf]  ;;  %v3339_v1 = vor.u32 %v4420_v52, %v3336_v54  ;;  %v3199_v11 = vor.u32 %v4387_v3, %v3198_v2  ;;  %v3150_v46 = vld [vmem:[#allocation6 + $0x188] sm:$0xf] }
  0x72   :  { %1673 = vmatpush.bf16.msra.mxu3 %v3531_v8  ;;  %v3704_v58 = vld [vmem:[#allocation6 + $0x5f0] sm:$0xf0]  ;;  %v4544_v59 = vld [vmem:[#allocation6 + $0x6e4] sm:$0xf]  ;;  %v3467_v4 = vor.u32 %v4452_v55, %v3464_v56  ;;  %v4375_v47 = vld [vmem:[#allocation6 + $0x194] sm:$0xf0] }
  0x73   :  { %1635 = vmatpush.bf16.msra.mxu0 %v3131_v14  ;;  %v3832_v61 = vld [vmem:[#allocation6 + $0x6f0] sm:$0xf0]  ;;  %v3707_v5 = vor.u32 %v4512_v57, %v3704_v58  ;;  %v4508_v8 = vld [vmem:[#allocation6 + $0x5c4] sm:$0xf]  ;;  %v4351_v14 = vld [vmem:[#allocation6 + $0xd4] sm:$0xf0]  ;;  %v3151_v54 = vor.u32 %v4375_v47, %v3150_v46 }
  0x74   :  { %1648 = vmatpush.bf16.msra.mxu1 %v3259_v15  ;;  %v3835_v6 = vor.u32 %v4544_v59, %v3832_v61  ;;  %v3688_v9 = vld [vmem:[#allocation6 + $0x5d0] sm:$0xf0]  ;;  %v4540_v10 = vld [vmem:[#allocation6 + $0x6c4] sm:$0xf]  ;;  %v3182_v15 = vld [vmem:[#allocation6 + $0x1c8] sm:$0xf]  ;;  %v3055_v23 = vor.u32 %v4351_v14, %v3054_v13 }
  0x75   :  { %1661 = vmatpush.bf16.msra.mxu2 %v3387_v16  ;;  %v3816_v12 = vld [vmem:[#allocation6 + $0x6d0] sm:$0xf0]  ;;  %v4383_v16 = vld [vmem:[#allocation6 + $0x1d4] sm:$0xf0]  ;;  %v3691_v17 = vor.u32 %v4508_v8, %v3688_v9  ;;  %v4536_v26 = vld [vmem:[#allocation6 + $0x6a4] sm:$0xf] }
  0x76   :  { %1674 = vmatpush.bf16.msra.mxu3 %v3515_v24  ;;  %v3819_v21 = vor.u32 %v4540_v10, %v3816_v12  ;;  %v4504_v24 = vld [vmem:[#allocation6 + $0x5a4] sm:$0xf]  ;;  %v3672_v25 = vld [vmem:[#allocation6 + $0x5b0] sm:$0xf0]  ;;  %v3183_v27 = vor.u32 %v4383_v16, %v3182_v15  ;;  %v3006_v56 = vld [vmem:[#allocation6 + $0x68] sm:$0xf] }
  0x77   :  { %1636 = vmatpush.bf16.msra.mxu0 %v3115_v30  ;;  %v3800_v28 = vld [vmem:[#allocation6 + $0x6b0] sm:$0xf0]  ;;  %v4347_v30 = vld [vmem:[#allocation6 + $0xb4] sm:$0xf0]  ;;  %v3675_v33 = vor.u32 %v4504_v24, %v3672_v25  ;;  %v4532_v39 = vld [vmem:[#allocation6 + $0x684] sm:$0xf] }
  0x78   :  { %1649 = vmatpush.bf16.msra.mxu1 %v3243_v31  ;;  %v3166_v31 = vld [vmem:[#allocation6 + $0x1a8] sm:$0xf]  ;;  %v3803_v34 = vor.u32 %v4536_v26, %v3800_v28  ;;  %v3039_v35 = vor.u32 %v4347_v30, %v3038_v29  ;;  %v3656_v38 = vld [vmem:[#allocation6 + $0x590] sm:$0xf0]  ;;  %v4496_v51 = vld [vmem:[#allocation6 + $0x564] sm:$0xf] }
  0x79   :  { %1662 = vmatpush.bf16.msra.mxu2 %v3371_v32  ;;  %v4379_v32 = vld [vmem:[#allocation6 + $0x1b4] sm:$0xf0]  ;;  %v3784_v43 = vld [vmem:[#allocation6 + $0x690] sm:$0xf0]  ;;  %v3134_v58 = vld [vmem:[#allocation6 + $0x168] sm:$0xf] }
  0x7a   :  { %1675 = vmatpush.bf16.msra.mxu3 %v3499_v36  ;;  %v4500_v36 = vld [vmem:[#allocation6 + $0x584] sm:$0xf]  ;;  %v3167_v42 = vor.u32 %v4379_v32, %v3166_v31  ;;  %v3640_v52 = vld [vmem:[#allocation6 + $0x570] sm:$0xf0]  ;;  %v4339_v57 = vld [vmem:[#allocation6 + $0x74] sm:$0xf0] }
  0x7b   :  { %1637 = vmatpush.bf16.msra.mxu0 %v3099_v45  ;;  %v4343_v45 = vld [vmem:[#allocation6 + $0x94] sm:$0xf0]  ;;  %v3768_v55 = vld [vmem:[#allocation6 + $0x670] sm:$0xf0]  ;;  %v3007_v62 = vor.u32 %v4339_v57, %v3006_v56  ;;  %v4492_v63 = vld [vmem:[#allocation6 + $0x544] sm:$0xf] }
  0x7c   :  { %1650 = vmatpush.bf16.msra.mxu1 %v3227_v48  ;;  %v3659_v48 = vor.u32 %v4500_v36, %v3656_v38  ;;  %v3023_v50 = vor.u32 %v4343_v45, %v3022_v44  ;;  %v4371_v59 = vld [vmem:[#allocation6 + $0x174] sm:$0xf0]  ;;  %v3752_v3 = vld [vmem:[#allocation6 + $0x650] sm:$0xf0]  ;;  %v4520_v13 = vld [vmem:[#allocation6 + $0x624] sm:$0xf] }
  0x7d   :  { %1663 = vmatpush.bf16.msra.mxu2 %v3355_v49  ;;  %v3787_v49 = vor.u32 %v4532_v39, %v3784_v43  ;;  %v3135_v2 = vor.u32 %v4371_v59, %v3134_v58  ;;  %v3608_v12 = vld [vmem:[#allocation6 + $0x530] sm:$0xf0]  ;;  %v2974_v16 = vld [vmem:[#allocation6 + $0x28] sm:$0xf]  ;;  %v4484_v25 = vld [vmem:[#allocation6 + $0x504] sm:$0xf] }
  0x7e   :  { %1676 = vmatpush.bf16.msra.mxu3 %v3483_v53  ;;  %v4528_v53 = vld [vmem:[#allocation6 + $0x664] sm:$0xf]  ;;  %v3736_v15 = vld [vmem:[#allocation6 + $0x630] sm:$0xf0]  ;;  %v2958_v31 = vld [vmem:[#allocation6 + $0x8] sm:$0xf] }
  0x7f   :  { %1638 = vmatpush.bf16.msra.mxu0 %v3083_v60  ;;  %v3643_v60 = vor.u32 %v4496_v51, %v3640_v52  ;;  %v3771_v61 = vor.u32 %v4528_v53, %v3768_v55  ;;  %v3592_v26 = vld [vmem:[#allocation6 + $0x510] sm:$0xf0]  ;;  %v4516_v29 = vld [vmem:[#allocation6 + $0x604] sm:$0xf]  ;;  %v3326_v36 = vld [vmem:[#allocation6 + $0x2e8] sm:$0xf] }
  0x80   :  { %1651 = vmatpush.bf16.msra.mxu1 %v3211_v0  ;;  %v3624_v0 = vld [vmem:[#allocation6 + $0x550] sm:$0xf0]  ;;  %v4419_v38 = vld [vmem:[#allocation6 + $0x2f4] sm:$0xf0]  ;;  %v3454_v39 = vld [vmem:[#allocation6 + $0x3e8] sm:$0xf] }
  0x81   :  { %1664 = vmatpush.bf16.msra.mxu2 %v3339_v1  ;;  %v4524_v1 = vld [vmem:[#allocation6 + $0x644] sm:$0xf]  ;;  %v3627_v8 = vor.u32 %v4492_v63, %v3624_v0  ;;  %v3720_v30 = vld [vmem:[#allocation6 + $0x610] sm:$0xf0]  ;;  %v4451_v43 = vld [vmem:[#allocation6 + $0x3f4] sm:$0xf0]  ;;  %v3327_v51 = vor.u32 %v4419_v38, %v3326_v36 }
  0x82   :  { %1677 = vmatpush.bf16.msra.mxu3 %v3467_v4  ;;  %1639 = vmatmul.bf16.vlgmr.msra.gmra.mxu0 %v4993_v22  ;;  %v2990_v4 = vld [vmem:[#allocation6 + $0x48] sm:$0xf]  ;;  %v3755_v9 = vor.u32 %v4524_v1, %v3752_v3  ;;  %v4483_v45 = vld [vmem:[#allocation6 + $0x4f4] sm:$0xf0]  ;;  %v3723_v46 = vor.u32 %v4516_v29, %v3720_v30  ;;  %v3455_v52 = vor.u32 %v4451_v43, %v3454_v39 }
  0x83   :  { %1683 = vmatpush.bf16.msrb.mxu0 %v3707_v5  ;;  %1652 = vmatmul.bf16.vlgmr.msra.gmra.mxu1 %v4987_v18  ;;  %v4335_v5 = vld [vmem:[#allocation6 + $0x54] sm:$0xf0]  ;;  %v3582_v44 = vld [vmem:[#allocation6 + $0x4e8] sm:$0xf] }
  0x84   :  { %1696 = vmatpush.bf16.msrb.mxu1 %v3835_v6  ;;  %1665 = vmatmul.bf16.vlgmr.msra.gmra.mxu2 %v4991_v20  ;;  %v3118_v6 = vld [vmem:[#allocation6 + $0x148] sm:$0xf]  ;;  %v2991_v10 = vor.u32 %v4335_v5, %v2990_v4  ;;  %v3583_v53 = vor.u32 %v4483_v45, %v3582_v44  ;;  %v4415_v55 = vld [vmem:[#allocation6 + $0x2d4] sm:$0xf0] }
  0x85   :  { %1709 = vmatpush.bf16.msrb.mxu2 %v3071_v7  ;;  %1678 = vmatmul.bf16.vlgmr.msra.gmra.mxu3 %v5001_v40  ;;  %v4367_v7 = vld [vmem:[#allocation6 + $0x154] sm:$0xf0]  ;;  %v3438_v56 = vld [vmem:[#allocation6 + $0x3c8] sm:$0xf] }
  0x86   :  { %1722 = vmatpush.bf16.msrb.mxu3 %v3199_v11  ;;  %v4488_v11 = vld [vmem:[#allocation6 + $0x524] sm:$0xf]  ;;  %v3119_v14 = vor.u32 %v4367_v7, %v3118_v6  ;;  %v4447_v58 = vld [vmem:[#allocation6 + $0x3d4] sm:$0xf0]  ;;  %v3566_v59 = vld [vmem:[#allocation6 + $0x4c8] sm:$0xf] }
  0x87   :  { %1684 = vmatpush.bf16.msrb.mxu0 %v3691_v17  ;;  %v4331_v17 = vld [vmem:[#allocation6 + $0x34] sm:$0xf0]  ;;  %v3611_v24 = vor.u32 %v4488_v11, %v3608_v12  ;;  %v3439_v0 = vor.u32 %v4447_v58, %v3438_v56  ;;  %v3422_v4 = vld [vmem:[#allocation6 + $0x3a8] sm:$0xf] }
  0x88   :  { %1697 = vmatpush.bf16.msrb.mxu1 %v3819_v21  ;;  %v3102_v21 = vld [vmem:[#allocation6 + $0x128] sm:$0xf]  ;;  %v2975_v28 = vor.u32 %v4331_v17, %v2974_v16  ;;  %v4411_v3 = vld [vmem:[#allocation6 + $0x2b4] sm:$0xf0] }
  0x89   :  { %1710 = vmatpush.bf16.msrb.mxu2 %v3055_v23  ;;  %v4363_v23 = vld [vmem:[#allocation6 + $0x134] sm:$0xf0]  ;;  %v3550_v7 = vld [vmem:[#allocation6 + $0x4a8] sm:$0xf] }
  0x8a   :  { %1723 = vmatpush.bf16.msrb.mxu3 %v3183_v27  ;;  %v3739_v27 = vor.u32 %v4520_v13, %v3736_v15  ;;  %v3103_v32 = vor.u32 %v4363_v23, %v3102_v21  ;;  %v4443_v6 = vld [vmem:[#allocation6 + $0x3b4] sm:$0xf0]  ;;  %v3406_v16 = vld [vmem:[#allocation6 + $0x388] sm:$0xf] }
  0x8b   :  { %1685 = vmatpush.bf16.msrb.mxu0 %v3675_v33  ;;  %v4327_v33 = vld [vmem:[#allocation6 + $0x14] sm:$0xf0]  ;;  %v3423_v12 = vor.u32 %v4443_v6, %v3422_v4  ;;  %v3534_v23 = vld [vmem:[#allocation6 + $0x488] sm:$0xf] }
  0x8c   :  { %1698 = vmatpush.bf16.msrb.mxu1 %v3803_v34  ;;  %v3086_v34 = vld [vmem:[#allocation6 + $0x108] sm:$0xf]  ;;  %v2959_v47 = vor.u32 %v4327_v33, %v2958_v31  ;;  %v4407_v15 = vld [vmem:[#allocation6 + $0x294] sm:$0xf0] }
  0x8d   :  { %1711 = vmatpush.bf16.msrb.mxu2 %v3039_v35  ;;  %v4359_v35 = vld [vmem:[#allocation6 + $0x114] sm:$0xf0]  ;;  %v3262_v30 = vld [vmem:[#allocation6 + $0x268] sm:$0xf] }
  0x8e   :  { %1724 = vmatpush.bf16.msrb.mxu3 %v3167_v42  ;;  %v3595_v42 = vor.u32 %v4484_v25, %v3592_v26  ;;  %v4439_v21 = vld [vmem:[#allocation6 + $0x394] sm:$0xf0]  ;;  %v3662_v25 = vld [vmem:[#allocation6 + $0x588] sm:$0xf] }
  0x8f   :  { %1686 = vmatpush.bf16.msrb.mxu0 %v3659_v48  ;;  %v3710_v48 = vld [vmem:[#allocation6 + $0x5e8] sm:$0xf]  ;;  %v4503_v26 = vld [vmem:[#allocation6 + $0x594] sm:$0xf0] }
  0x90   :  { %1699 = vmatpush.bf16.msrb.mxu1 %v3787_v49  ;;  %v4515_v49 = vld [vmem:[#allocation6 + $0x5f4] sm:$0xf0]  ;;  %v3663_v33 = vor.u32 %v4503_v26, %v3662_v25  ;;  %v3646_v38 = vld [vmem:[#allocation6 + $0x568] sm:$0xf] }
  0x91   :  { %1712 = vmatpush.bf16.msrb.mxu2 %v3023_v50  ;;  %v3087_v50 = vor.u32 %v4359_v35, %v3086_v34  ;;  %v3711_v57 = vor.u32 %v4515_v49, %v3710_v48  ;;  %v4403_v31 = vld [vmem:[#allocation6 + $0x274] sm:$0xf0]  ;;  %v3518_v35 = vld [vmem:[#allocation6 + $0x468] sm:$0xf] }
  0x92   :  { %1725 = vmatpush.bf16.msrb.mxu3 %v3151_v54  ;;  %v3310_v54 = vld [vmem:[#allocation6 + $0x2c8] sm:$0xf]  ;;  %v4435_v34 = vld [vmem:[#allocation6 + $0x374] sm:$0xf0] }
  0x93   :  { %1687 = vmatpush.bf16.msrb.mxu0 %v3643_v60  ;;  %v4479_v60 = vld [vmem:[#allocation6 + $0x4d4] sm:$0xf0]  ;;  %v3311_v63 = vor.u32 %v4415_v55, %v3310_v54  ;;  %v3246_v45 = vld [vmem:[#allocation6 + $0x248] sm:$0xf] }
  0x94   :  { %1700 = vmatpush.bf16.msrb.mxu1 %v3771_v61  ;;  %v3694_v61 = vld [vmem:[#allocation6 + $0x5c8] sm:$0xf]  ;;  %v3567_v1 = vor.u32 %v4479_v60, %v3566_v59  ;;  %v4467_v36 = vld [vmem:[#allocation6 + $0x474] sm:$0xf0] }
  0x95   :  { %1713 = vmatpush.bf16.msrb.mxu2 %v3007_v62  ;;  %v4511_v62 = vld [vmem:[#allocation6 + $0x5d4] sm:$0xf0]  ;;  %v3519_v44 = vor.u32 %v4467_v36, %v3518_v35  ;;  %v3358_v59 = vld [vmem:[#allocation6 + $0x328] sm:$0xf]  ;;  %v4349_v35 = vld [vmem:[#allocation6 + $0xcc] sm:$0xf] }
  0x96   :  { %1726 = vmatpush.bf16.msrb.mxu3 %v3135_v2  ;;  %v3294_v2 = vld [vmem:[#allocation6 + $0x2a8] sm:$0xf]  ;;  %v3695_v5 = vor.u32 %v4511_v62, %v3694_v61  ;;  %v4499_v39 = vld [vmem:[#allocation6 + $0x574] sm:$0xf0] }
  0x97   :  { %1688 = vmatpush.bf16.msrb.mxu0 %v3627_v8  ;;  %v4475_v8 = vld [vmem:[#allocation6 + $0x4b4] sm:$0xf0]  ;;  %v3295_v11 = vor.u32 %v4411_v3, %v3294_v2  ;;  %v3647_v48 = vor.u32 %v4499_v39, %v3646_v38  ;;  %v3486_v62 = vld [vmem:[#allocation6 + $0x428] sm:$0xf]  ;;  %v3056_v38 = vld [vmem:[#allocation6 + $0xd8] sm:$0xf0] }
  0x98   :  { %1701 = vmatpush.bf16.msrb.mxu1 %v3755_v9  ;;  %v3678_v9 = vld [vmem:[#allocation6 + $0x5a8] sm:$0xf]  ;;  %v3551_v13 = vor.u32 %v4475_v8, %v3550_v7  ;;  %v4431_v49 = vld [vmem:[#allocation6 + $0x354] sm:$0xf0]  ;;  %v4381_v39 = vld [vmem:[#allocation6 + $0x1cc] sm:$0xf] }
  0x99   :  { %1714 = vmatpush.bf16.msrb.mxu2 %v2991_v10  ;;  %v4507_v10 = vld [vmem:[#allocation6 + $0x5b4] sm:$0xf0]  ;;  %v3214_v3 = vld [vmem:[#allocation6 + $0x208] sm:$0xf] }
  0x9a   :  { %1727 = vmatpush.bf16.msrb.mxu3 %v3119_v14  ;;  %v3278_v14 = vld [vmem:[#allocation6 + $0x288] sm:$0xf]  ;;  %v3679_v17 = vor.u32 %v4507_v10, %v3678_v9  ;;  %v4395_v58 = vld [vmem:[#allocation6 + $0x234] sm:$0xf0] }
  0x9b   :  { %1689 = vmatpush.bf16.msrb.mxu0 %v3611_v24  ;;  %v4471_v24 = vld [vmem:[#allocation6 + $0x494] sm:$0xf0]  ;;  %v3342_v7 = vld [vmem:[#allocation6 + $0x308] sm:$0xf] }
  0x9c   :  { %1702 = vmatpush.bf16.msrb.mxu1 %v3739_v27  ;;  %v3279_v27 = vor.u32 %v4407_v15, %v3278_v14  ;;  %v3535_v29 = vor.u32 %v4471_v24, %v3534_v23  ;;  %v4427_v61 = vld [vmem:[#allocation6 + $0x334] sm:$0xf0]  ;;  %v3470_v9 = vld [vmem:[#allocation6 + $0x408] sm:$0xf]  ;;  %v4385_v23 = vld [vmem:[#allocation6 + $0x1ec] sm:$0xf] }
  0x9d   :  { %1715 = vmatpush.bf16.msrb.mxu2 %v2975_v28  ;;  %v3407_v28 = vor.u32 %v4439_v21, %v3406_v16  ;;  %v4391_v4 = vld [vmem:[#allocation6 + $0x214] sm:$0xf0]  ;;  %v3838_v14 = vld [vmem:[#allocation6 + $0x6e8] sm:$0xf]  ;;  %v4353_v16 = vld [vmem:[#allocation6 + $0xec] sm:$0xf] }
  0x9e   :  { %1728 = vmatpush.bf16.msrb.mxu3 %v3103_v32  ;;  %v3390_v32 = vld [vmem:[#allocation6 + $0x368] sm:$0xf]  ;;  %v4423_v8 = vld [vmem:[#allocation6 + $0x314] sm:$0xf0]  ;;  %v3072_v21 = vld [vmem:[#allocation6 + $0xf8] sm:$0xf0] }
  0x9f   :  { %1690 = vmatpush.bf16.msrb.mxu0 %v3595_v42  ;;  %v3263_v42 = vor.u32 %v4403_v31, %v3262_v30  ;;  %v3391_v43 = vor.u32 %v4435_v34, %v3390_v32  ;;  %v4547_v15 = vld [vmem:[#allocation6 + $0x6f4] sm:$0xf0]  ;;  %v3200_v24 = vld [vmem:[#allocation6 + $0x1f8] sm:$0xf0]  ;;  %v3343_v25 = vor.u32 %v4423_v8, %v3342_v7  ;;  %v3075_v31 = vor.u32 %v4353_v16, %v3072_v21  ;;  %v4401_v16 = vld [vmem:[#allocation6 + $0x26c] sm:$0xf] }
  0xa0   :  { %1703 = vmatpush.bf16.msrb.mxu1 %v3723_v46  ;;  %v4399_v46 = vld [vmem:[#allocation6 + $0x254] sm:$0xf0]  ;;  %v3839_v30 = vor.u32 %v4547_v15, %v3838_v14  ;;  %v3203_v32 = vor.u32 %v4385_v23, %v3200_v24  ;;  %v3136_v14 = vld [vmem:[#allocation6 + $0x178] sm:$0xf0]  ;;  %v5021_v15 = vld [vmem:[#allocation8] sm:$0xf] }
  0xa1   :  { %1716 = vmatpush.bf16.msrb.mxu2 %v2959_v47  ;;  %v3374_v47 = vld [vmem:[#allocation6 + $0x348] sm:$0xf]  ;;  %v3247_v54 = vor.u32 %v4399_v46, %v3246_v45  ;;  %v4543_v34 = vld [vmem:[#allocation6 + $0x6d4] sm:$0xf0]  ;;  %v3059_v46 = vor.u32 %v4349_v35, %v3056_v38 }
  0xa2   :  { %1729 = vmatpush.bf16.msrb.mxu3 %v3087_v50  ;;  %1691 = vmatmul.bf16.vlgmr.msrb.gmra.mxu0 %v5003_v41  ;;  %v3502_v50 = vld [vmem:[#allocation6 + $0x448] sm:$0xf]  ;;  %v3375_v55 = vor.u32 %v4431_v49, %v3374_v47  ;;  %v4539_v49 = vld [vmem:[#allocation6 + $0x6b4] sm:$0xf0] }
  0xa3   :  { %1735 = vmatpush.bf16.msra.mxu0 %v3327_v51  ;;  %1704 = vmatmul.bf16.vlgmr.msrb.gmra.mxu1 %v4999_v37  ;;  %v4463_v51 = vld [vmem:[#allocation6 + $0x454] sm:$0xf0]  ;;  %v3758_v23 = vld [vmem:[#allocation6 + $0x648] sm:$0xf] }
  0xa4   :  { %1748 = vmatpush.bf16.msra.mxu1 %v3455_v52  ;;  %1717 = vmatmul.bf16.vlgmr.msrb.gmra.mxu2 %v4989_v19  ;;  %v3630_v52 = vld [vmem:[#allocation6 + $0x548] sm:$0xf]  ;;  %v3503_v56 = vor.u32 %v4463_v51, %v3502_v50  ;;  %v4345_v50 = vld [vmem:[#allocation6 + $0xac] sm:$0xf] }
  0xa5   :  { %1761 = vmatpush.bf16.msra.mxu2 %v3583_v53  ;;  %1730 = vmatmul.bf16.vlgmr.msrb.gmra.mxu3 %v4993_v22  ;;  %v4495_v53 = vld [vmem:[#allocation6 + $0x554] sm:$0xf0] }
  0xa6   :  { %1774 = vmatpush.bf16.msra.mxu3 %v3711_v57  ;;  %v3230_v57 = vld [vmem:[#allocation6 + $0x228] sm:$0xf]  ;;  %v3631_v60 = vor.u32 %v4495_v53, %v3630_v52  ;;  %v3040_v52 = vld [vmem:[#allocation6 + $0xb8] sm:$0xf0]  ;;  %v4377_v53 = vld [vmem:[#allocation6 + $0x1ac] sm:$0xf] }
  0xa7   :  { %1736 = vmatpush.bf16.msra.mxu0 %v3311_v63  ;;  %v4459_v63 = vld [vmem:[#allocation6 + $0x434] sm:$0xf0]  ;;  %v3231_v2 = vor.u32 %v4395_v58, %v3230_v57  ;;  %v3043_v58 = vor.u32 %v4345_v50, %v3040_v52  ;;  %v3104_v50 = vld [vmem:[#allocation6 + $0x138] sm:$0xf0] }
  0xa8   :  { %1749 = vmatpush.bf16.msra.mxu1 %v3439_v0  ;;  %v3614_v0 = vld [vmem:[#allocation6 + $0x528] sm:$0xf]  ;;  %v3487_v6 = vor.u32 %v4459_v63, %v3486_v62  ;;  %v4341_v62 = vld [vmem:[#allocation6 + $0x8c] sm:$0xf]  ;;  %v3232_v52 = vld [vmem:[#allocation6 + $0x238] sm:$0xf0] }
  0xa9   :  { %1762 = vmatpush.bf16.msra.mxu2 %v3567_v1  ;;  %v4491_v1 = vld [vmem:[#allocation6 + $0x534] sm:$0xf0] }
  0xaa   :  { %1775 = vmatpush.bf16.msra.mxu3 %v3695_v5  ;;  %v3359_v5 = vor.u32 %v4427_v61, %v3358_v59  ;;  %v3615_v10 = vor.u32 %v4491_v1, %v3614_v0  ;;  %v4535_v61 = vld [vmem:[#allocation6 + $0x694] sm:$0xf0]  ;;  %v3024_v0 = vld [vmem:[#allocation6 + $0x98] sm:$0xf0]  ;;  %v4373_v1 = vld [vmem:[#allocation6 + $0x18c] sm:$0xf] }
  0xab   :  { %1737 = vmatpush.bf16.msra.mxu0 %v3295_v11  ;;  %v4455_v11 = vld [vmem:[#allocation6 + $0x414] sm:$0xf0]  ;;  %v3027_v7 = vor.u32 %v4341_v62, %v3024_v0  ;;  %v3088_v0 = vld [vmem:[#allocation6 + $0x118] sm:$0xf0] }
  0xac   :  { %1750 = vmatpush.bf16.msra.mxu1 %v3423_v12  ;;  %v3598_v12 = vld [vmem:[#allocation6 + $0x508] sm:$0xf]  ;;  %v3471_v26 = vor.u32 %v4455_v11, %v3470_v9  ;;  %v4531_v9 = vld [vmem:[#allocation6 + $0x674] sm:$0xf0]  ;;  %v3008_v11 = vld [vmem:[#allocation6 + $0x78] sm:$0xf0] }
  0xad   :  { %1763 = vmatpush.bf16.msra.mxu2 %v3551_v13  ;;  %v4487_v13 = vld [vmem:[#allocation6 + $0x514] sm:$0xf0] }
  0xae   :  { %1776 = vmatpush.bf16.msra.mxu3 %v3679_v17  ;;  %v3215_v17 = vor.u32 %v4391_v4, %v3214_v3  ;;  %v4405_v3 = vld [vmem:[#allocation6 + $0x28c] sm:$0xf]  ;;  %v3280_v4 = vld [vmem:[#allocation6 + $0x298] sm:$0xf0] }
  0xaf   :  { %1738 = vmatpush.bf16.msra.mxu0 %v3279_v27  ;;  %v4417_v27 = vld [vmem:[#allocation6 + $0x2ec] sm:$0xf] }
  0xb0   :  { %1751 = vmatpush.bf16.msra.mxu1 %v3407_v28  ;;  %v3328_v28 = vld [vmem:[#allocation6 + $0x2f8] sm:$0xf0] }
  0xb1   :  { %1764 = vmatpush.bf16.msra.mxu2 %v3535_v29  ;;  %v3599_v29 = vor.u32 %v4487_v13, %v3598_v12  ;;  %v3331_v36 = vor.u32 %v4417_v27, %v3328_v28  ;;  %v3283_v12 = vor.u32 %v4405_v3, %v3280_v4  ;;  %v4369_v13 = vld [vmem:[#allocation6 + $0x16c] sm:$0xf]  ;;  %v374_v28 = vperm.slane %v5021_v15, 0 }
  0xb2   :  { %1777 = vmatpush.bf16.msra.mxu3 %v3663_v33  ;;  %v3822_v33 = vld [vmem:[#allocation6 + $0x6c8] sm:$0xf]  ;;  %v4333_v27 = vld [vmem:[#allocation6 + $0x4c] sm:$0xf] }
  0xb3   :  { %1739 = vmatpush.bf16.msra.mxu0 %v3263_v42  ;;  %v3184_v42 = vld [vmem:[#allocation6 + $0x1d8] sm:$0xf0]  ;;  %v3823_v45 = vor.u32 %v4543_v34, %v3822_v33  ;;  %v4397_v33 = vld [vmem:[#allocation6 + $0x24c] sm:$0xf] }
  0xb4   :  { %1752 = vmatpush.bf16.msra.mxu1 %v3391_v43  ;;  %v4413_v43 = vld [vmem:[#allocation6 + $0x2cc] sm:$0xf]  ;;  %v3187_v47 = vor.u32 %v4381_v39, %v3184_v42  ;;  %v3248_v34 = vld [vmem:[#allocation6 + $0x258] sm:$0xf0]  ;;  %v3742_v42 = vld [vmem:[#allocation6 + $0x628] sm:$0xf] }
  0xb5   :  { %1765 = vmatpush.bf16.msra.mxu2 %v3519_v44  ;;  %v3312_v44 = vld [vmem:[#allocation6 + $0x2d8] sm:$0xf0] }
  0xb6   :  { %1778 = vmatpush.bf16.msra.mxu3 %v3647_v48  ;;  %v3806_v48 = vld [vmem:[#allocation6 + $0x6a8] sm:$0xf]  ;;  %v3315_v51 = vor.u32 %v4413_v43, %v3312_v44  ;;  %v4523_v43 = vld [vmem:[#allocation6 + $0x634] sm:$0xf0]  ;;  %v4329_v44 = vld [vmem:[#allocation6 + $0x2c] sm:$0xf] }
  0xb7   :  { %1740 = vmatpush.bf16.msra.mxu0 %v3247_v54  ;;  %v3168_v54 = vld [vmem:[#allocation6 + $0x1b8] sm:$0xf0]  ;;  %v3807_v57 = vor.u32 %v4539_v49, %v3806_v48  ;;  %v4361_v49 = vld [vmem:[#allocation6 + $0x12c] sm:$0xf] }
  0xb8   :  { %1753 = vmatpush.bf16.msra.mxu1 %v3375_v55  ;;  %v4409_v55 = vld [vmem:[#allocation6 + $0x2ac] sm:$0xf]  ;;  %v3171_v59 = vor.u32 %v4377_v53, %v3168_v54  ;;  %v2976_v48 = vld [vmem:[#allocation6 + $0x38] sm:$0xf0]  ;;  %v3743_v54 = vor.u32 %v4523_v43, %v3742_v42 }
  0xb9   :  { %1766 = vmatpush.bf16.msra.mxu2 %v3503_v56  ;;  %v3296_v56 = vld [vmem:[#allocation6 + $0x2b8] sm:$0xf0] }
  0xba   :  { %1779 = vmatpush.bf16.msra.mxu3 %v3631_v60  ;;  %v3790_v60 = vld [vmem:[#allocation6 + $0x688] sm:$0xf]  ;;  %v3299_v63 = vor.u32 %v4409_v55, %v3296_v56  ;;  %v4519_v56 = vld [vmem:[#allocation6 + $0x614] sm:$0xf0] }
  0xbb   :  { %1741 = vmatpush.bf16.msra.mxu0 %v3231_v2  ;;  %v3152_v2 = vld [vmem:[#allocation6 + $0x198] sm:$0xf0]  ;;  %v3726_v55 = vld [vmem:[#allocation6 + $0x608] sm:$0xf] }
  0xbc   :  { %1754 = vmatpush.bf16.msra.mxu1 %v3359_v5  ;;  %v3791_v5 = vor.u32 %v4535_v61, %v3790_v60  ;;  %v3155_v8 = vor.u32 %v4373_v1, %v3152_v2  ;;  %v2960_v60 = vld [vmem:[#allocation6 + $0x18] sm:$0xf0]  ;;  %v4357_v61 = vld [vmem:[#allocation6 + $0x10c] sm:$0xf] }
  0xbd   :  { %1767 = vmatpush.bf16.msra.mxu2 %v3487_v6  ;;  %v3774_v6 = vld [vmem:[#allocation6 + $0x668] sm:$0xf]  ;;  %v4389_v1 = vld [vmem:[#allocation6 + $0x20c] sm:$0xf]  ;;  %v3216_v2 = vld [vmem:[#allocation6 + $0x218] sm:$0xf0] }
  0xbe   :  { %1780 = vmatpush.bf16.msra.mxu3 %v3615_v10  ;;  %v4337_v10 = vld [vmem:[#allocation6 + $0x6c] sm:$0xf]  ;;  %v3775_v21 = vor.u32 %v4531_v9, %v3774_v6  ;;  %v3456_v6 = vld [vmem:[#allocation6 + $0x3f8] sm:$0xf0] }
  0xbf   :  { %1742 = vmatpush.bf16.msra.mxu0 %v3215_v17  ;;  %v3264_v17 = vld [vmem:[#allocation6 + $0x278] sm:$0xf0]  ;;  %v3011_v24 = vor.u32 %v4337_v10, %v3008_v11  ;;  %v4513_v10 = vld [vmem:[#allocation6 + $0x5ec] sm:$0xf] }
  0xc0   :  { %1755 = vmatpush.bf16.msra.mxu1 %v3343_v25  ;;  %v3139_v25 = vor.u32 %v4369_v13, %v3136_v14  ;;  %v3584_v9 = vld [vmem:[#allocation6 + $0x4f8] sm:$0xf0] }
  0xc1   :  { %1768 = vmatpush.bf16.msra.mxu2 %v3471_v26  ;;  %v4527_v26 = vld [vmem:[#allocation6 + $0x654] sm:$0xf0]  ;;  %v3712_v11 = vld [vmem:[#allocation6 + $0x5f8] sm:$0xf0] }
  0xc2   :  { %1781 = vmatpush.bf16.msra.mxu3 %v3599_v29  ;;  %1743 = vmatmul.bf16.vlgmr.msra.gmra.mxu0 %v4987_v18  ;;  %v3267_v29 = vor.u32 %v4401_v16, %v3264_v17  ;;  %v3759_v35 = vor.u32 %v4527_v26, %v3758_v23  ;;  %v3091_v16 = vor.u32 %v4357_v61, %v3088_v0  ;;  %v4545_v17 = vld [vmem:[#allocation6 + $0x6ec] sm:$0xf]  ;;  %v3536_v61 = vld [vmem:[#allocation6 + $0x498] sm:$0xf0] }
  0xc3   :  { %1787 = vmatpush.bf16.msrb.mxu0 %v3839_v30  ;;  %1756 = vmatmul.bf16.vlgmr.msra.gmra.mxu1 %v4991_v20  ;;  %v2992_v30 = vld [vmem:[#allocation6 + $0x58] sm:$0xf0] }
  0xc4   :  { %1800 = vmatpush.bf16.msrb.mxu1 %v3075_v31  ;;  %1769 = vmatmul.bf16.vlgmr.msra.gmra.mxu2 %v5001_v40  ;;  %v4365_v31 = vld [vmem:[#allocation6 + $0x14c] sm:$0xf]  ;;  %v2995_v38 = vor.u32 %v4333_v27, %v2992_v30  ;;  %v3715_v27 = vor.u32 %v4513_v10, %v3712_v11  ;;  %v3792_v0 = vld [vmem:[#allocation6 + $0x698] sm:$0xf0] }
  0xc5   :  { %1813 = vmatpush.bf16.msrb.mxu2 %v3203_v32  ;;  %1782 = vmatmul.bf16.vlgmr.msra.gmra.mxu3 %v5003_v41  ;;  %v3120_v32 = vld [vmem:[#allocation6 + $0x158] sm:$0xf0]  ;;  %v4477_v30 = vld [vmem:[#allocation6 + $0x4cc] sm:$0xf] }
  0xc6   :  { %1826 = vmatpush.bf16.msrb.mxu3 %v3331_v36  ;;  %v1536_v36 = vpop.f32.mrf.mxu0  ;;  %v3123_v39 = vor.u32 %v4365_v31, %v3120_v32  ;;  %v3568_v32 = vld [vmem:[#allocation6 + $0x4d8] sm:$0xf0]  ;;  %v4529_v11 = vld [vmem:[#allocation6 + $0x66c] sm:$0xf] }
  0xc7   :  { %1788 = vmatpush.bf16.msrb.mxu0 %v3823_v45  ;;  %v1537_v45 = vadd.f32 %v1536_v36, %v374_v28  ;;  %v4445_v28 = vld [vmem:[#allocation6 + $0x3cc] sm:$0xf]  ;;  %v3824_v36 = vld [vmem:[#allocation6 + $0x6d8] sm:$0xf0]  ;;  %v3571_v43 = vor.u32 %v4477_v30, %v3568_v32 }
  0xc8   :  { %1801 = vmatpush.bf16.msrb.mxu1 %v3059_v46  ;;  %v1549_v46 = vpop.f32.mrf.mxu1  ;;  %v3648_v10 = vld [vmem:[#allocation6 + $0x578] sm:$0xf0]  ;;  %v4525_v30 = vld [vmem:[#allocation6 + $0x64c] sm:$0xf] }
  0xc9   :  { %1814 = vmatpush.bf16.msrb.mxu2 %v3187_v47  ;;  %v3251_v47 = vor.u32 %v4397_v33, %v3248_v34  ;;  %v1550_v53 = vadd.f32 %v1549_v46, %v1537_v45  ;;  %v4509_v33 = vld [vmem:[#allocation6 + $0x5cc] sm:$0xf]  ;;  %v3696_v34 = vld [vmem:[#allocation6 + $0x5d8] sm:$0xf0] }
  0xca   :  { %1827 = vmatpush.bf16.msrb.mxu3 %v3315_v51  ;;  %v4393_v51 = vld [vmem:[#allocation6 + $0x22c] sm:$0xf]  ;;  %v3424_v46 = vld [vmem:[#allocation6 + $0x3b8] sm:$0xf0] }
  0xcb   :  { %1789 = vmatpush.bf16.msrb.mxu0 %v3807_v57  ;;  %v2979_v57 = vor.u32 %v4329_v44, %v2976_v48  ;;  %v3699_v44 = vor.u32 %v4509_v33, %v3696_v34  ;;  %v4441_v45 = vld [vmem:[#allocation6 + $0x3ac] sm:$0xf] }
  0xcc   :  { %1802 = vmatpush.bf16.msrb.mxu1 %v3043_v58  ;;  %v3107_v58 = vor.u32 %v4361_v49, %v3104_v50  ;;  %v3552_v49 = vld [vmem:[#allocation6 + $0x4b8] sm:$0xf0]  ;;  %v4505_v50 = vld [vmem:[#allocation6 + $0x5ac] sm:$0xf] }
  0xcd   :  { %1815 = vmatpush.bf16.msrb.mxu2 %v3171_v59  ;;  %v4325_v59 = vld [vmem:[#allocation6 + $0xc] sm:$0xf] }
  0xce   :  { %1828 = vmatpush.bf16.msrb.mxu3 %v3299_v63  ;;  %v3235_v63 = vor.u32 %v4393_v51, %v3232_v52  ;;  %v1538_v13 = vpop.f32.mrf.mxu0  ;;  %v2963_v14 = vor.u32 %v4325_v59, %v2960_v60  ;;  %v3680_v51 = vld [vmem:[#allocation6 + $0x5b8] sm:$0xf0]  ;;  %v4537_v52 = vld [vmem:[#allocation6 + $0x6ac] sm:$0xf] }
  0xcf   :  { %1790 = vmatpush.bf16.msrb.mxu0 %v3791_v5  ;;  %v4449_v5 = vld [vmem:[#allocation6 + $0x3ec] sm:$0xf]  ;;  %v3776_v13 = vld [vmem:[#allocation6 + $0x678] sm:$0xf0] }
  0xd0   :  { %1803 = vmatpush.bf16.msrb.mxu1 %v3027_v7  ;;  %v4481_v7 = vld [vmem:[#allocation6 + $0x4ec] sm:$0xf]  ;;  %v1551_v23 = vpop.f32.mrf.mxu1 }
  0xd1   :  { %1816 = vmatpush.bf16.msrb.mxu2 %v3155_v8  ;;  %v1562_v62 = vpop.f32.mrf.mxu2  ;;  %v3727_v8 = vor.u32 %v4519_v56, %v3726_v55  ;;  %v3587_v26 = vor.u32 %v4481_v7, %v3584_v9  ;;  %v3683_v56 = vor.u32 %v4505_v50, %v3680_v51  ;;  %v4469_v59 = vld [vmem:[#allocation6 + $0x48c] sm:$0xf]  ;;  %v3376_v23 = vld [vmem:[#allocation6 + $0x358] sm:$0xf0] }
  0xd2   :  { %1829 = vmatpush.bf16.msrb.mxu3 %v3283_v12  ;;  %v1563_v3 = vadd.f32 %v1562_v62, %v1550_v53  ;;  %v1575_v4 = vpop.f32.mrf.mxu3  ;;  %v3808_v53 = vld [vmem:[#allocation6 + $0x6b8] sm:$0xf0]  ;;  %v4501_v62 = vld [vmem:[#allocation6 + $0x58c] sm:$0xf] }
  0xd3   :  { %1791 = vmatpush.bf16.msrb.mxu0 %v3775_v21  ;;  %v3840_v21 = vld [vmem:[#allocation6 + $0x6f8] sm:$0xf0]  ;;  %v3811_v60 = vor.u32 %v4537_v52, %v3808_v53  ;;  %v4497_v9 = vld [vmem:[#allocation6 + $0x56c] sm:$0xf] }
  0xd4   :  { %1804 = vmatpush.bf16.msrb.mxu1 %v3011_v24  ;;  %v5024_v12 = vadd.f32 %v1575_v4, %v1563_v3  ;;  %v3219_v24 = vor.u32 %v4389_v1, %v3216_v2  ;;  %v3843_v31 = vor.u32 %v4545_v17, %v3840_v21  ;;  %v4433_v4 = vld [vmem:[#allocation6 + $0x36c] sm:$0xf]  ;;  %v3651_v17 = vor.u32 %v4497_v9, %v3648_v10  ;;  %v3894_v9 = vld [vmem:[#allocation9 + $0x60] sm:$0xf] }
  0xd5   :  { %1817 = vmatpush.bf16.msrb.mxu2 %v3139_v25  ;;  %v3459_v25 = vor.u32 %v4449_v5, %v3456_v6  ;;  %v3392_v5 = vld [vmem:[#allocation6 + $0x378] sm:$0xf0]  ;;  %v4465_v6 = vld [vmem:[#allocation6 + $0x46c] sm:$0xf] }
  0xd6   :  { %1830 = vmatpush.bf16.msrb.mxu3 %v3267_v29  ;;  %v3440_v29 = vld [vmem:[#allocation6 + $0x3d8] sm:$0xf0]  ;;  %v4429_v21 = vld [vmem:[#allocation6 + $0x34c] sm:$0xf] }
  0xd7   :  { %1792 = vmatpush.bf16.msrb.mxu0 %v3759_v35  ;;  %v4541_v35 = vld [vmem:[#allocation6 + $0x6cc] sm:$0xf]  ;;  %v3379_v33 = vor.u32 %v4429_v21, %v3376_v23  ;;  %v4559_v21 = vld [vmem:[#allocation9 + $0x54] sm:$0xf0]  ;;  %v3950_v23 = vld [vmem:[#allocation9 + $0xd0] sm:$0xf] }
  0xd8   :  { %1805 = vmatpush.bf16.msrb.mxu1 %v2995_v38  ;;  %v3827_v48 = vor.u32 %v4541_v35, %v3824_v36  ;;  %v4421_v51 = vld [vmem:[#allocation6 + $0x30c] sm:$0xf] }
  0xd9   :  { %1818 = vmatpush.bf16.msrb.mxu2 %v3123_v39  ;;  %v1564_v38 = vpop.f32.mrf.mxu2  ;;  %v3443_v39 = vor.u32 %v4445_v28, %v3440_v29  ;;  %v4493_v28 = vld [vmem:[#allocation6 + $0x54c] sm:$0xf]  ;;  %v3632_v29 = vld [vmem:[#allocation6 + $0x558] sm:$0xf0] }
  0xda   :  { %1831 = vmatpush.bf16.msrb.mxu3 %v3251_v47  ;;  %v1577_v42 = vpop.f32.mrf.mxu3  ;;  %v4473_v47 = vld [vmem:[#allocation6 + $0x4ac] sm:$0xf]  ;;  %v3635_v38 = vor.u32 %v4493_v28, %v3632_v29  ;;  %v3878_v28 = vld [vmem:[#allocation9 + $0x40] sm:$0xf] }
  0xdb   :  { %1793 = vmatpush.bf16.msrb.mxu0 %v3743_v54  ;;  %v3427_v54 = vor.u32 %v4441_v45, %v3424_v46  ;;  %v3555_v55 = vor.u32 %v4473_v47, %v3552_v49  ;;  %v3360_v42 = vld [vmem:[#allocation6 + $0x338] sm:$0xf0]  ;;  %v4489_v46 = vld [vmem:[#allocation6 + $0x52c] sm:$0xf] }
  0xdc   :  { %1806 = vmatpush.bf16.msrb.mxu1 %v2979_v57  ;;  %v4437_v57 = vld [vmem:[#allocation6 + $0x38c] sm:$0xf]  ;;  %v3488_v45 = vld [vmem:[#allocation6 + $0x438] sm:$0xf0] }
  0xdd   :  { %1819 = vmatpush.bf16.msrb.mxu2 %v3107_v58  ;;  %v3408_v58 = vld [vmem:[#allocation6 + $0x398] sm:$0xf0]  ;;  %v4561_v10 = vld [vmem:[#allocation9 + $0x64] sm:$0xf0] }
  0xde   :  { %1832 = vmatpush.bf16.msrb.mxu3 %v3235_v63  ;;  %v4533_v63 = vld [vmem:[#allocation6 + $0x68c] sm:$0xf]  ;;  %v3616_v47 = vld [vmem:[#allocation6 + $0x538] sm:$0xf0] }
  0xdf   :  { %1794 = vmatpush.bf16.msrb.mxu0 %v3727_v8  ;;  %v5030_v1 = vpop.f32.mrf.mxu0  ;;  %v3795_v7 = vor.u32 %v4533_v63, %v3792_v0  ;;  %v3520_v8 = vld [vmem:[#allocation6 + $0x478] sm:$0xf0]  ;;  %v3619_v53 = vor.u32 %v4489_v46, %v3616_v47  ;;  %v3902_v63 = vld [vmem:[#allocation9 + $0x70] sm:$0xf]  ;;  %v4557_v29 = vld [vmem:[#allocation9 + $0x44] sm:$0xf0] }
  0xe0   :  { %1807 = vmatpush.bf16.msrb.mxu1 %v2963_v14  ;;  %v5032_v2 = vpop.f32.mrf.mxu1  ;;  %v3395_v14 = vor.u32 %v4433_v4, %v3392_v5  ;;  %v3744_v49 = vld [vmem:[#allocation6 + $0x638] sm:$0xf0]  ;;  %v3926_v46 = vld [vmem:[#allocation9 + $0xa0] sm:$0xf]  ;;  %v4569_v47 = vld [vmem:[#allocation9 + $0xa4] sm:$0xf0] }
  0xe1   :  { %1820 = vmatpush.bf16.msrb.mxu2 %v3091_v16  ;;  %v3523_v16 = vor.u32 %v4465_v6, %v3520_v8  ;;  %v4563_v0 = vld [vmem:[#allocation9 + $0x74] sm:$0xf0] }
  0xe2   :  { %1833 = vmatpush.bf16.msrb.mxu3 %v3219_v24  ;;  %1795 = vmatmul.bf16.vlgmr.msrb.gmra.mxu0 %v4999_v37  ;;  %v4461_v24 = vld [vmem:[#allocation6 + $0x44c] sm:$0xf] }
  0xe3   :  { %1839 = vmatpush.bf16.msra.mxu0 %v3459_v25  ;;  %1808 = vmatmul.bf16.vlgmr.msrb.gmra.mxu1 %v4989_v19  ;;  %v3539_v19 = vor.u32 %v4469_v59, %v3536_v61  ;;  %v4485_v59 = vld [vmem:[#allocation6 + $0x50c] sm:$0xf] }
  0xe4   :  { %1852 = vmatpush.bf16.msra.mxu1 %v3587_v26  ;;  %1821 = vmatmul.bf16.vlgmr.msrb.gmra.mxu2 %v4993_v22  ;;  %v3664_v22 = vld [vmem:[#allocation6 + $0x598] sm:$0xf0]  ;;  %v3779_v26 = vor.u32 %v4529_v11, %v3776_v13  ;;  %v4517_v61 = vld [vmem:[#allocation6 + $0x60c] sm:$0xf]  ;;  %v3958_v11 = vld [vmem:[#allocation9 + $0xe0] sm:$0xf] }
  0xe5   :  { %1865 = vmatpush.bf16.msra.mxu2 %v3715_v27  ;;  %1834 = vmatmul.bf16.vlgmr.msrb.gmra.mxu3 %v4987_v18  ;;  %v3411_v18 = vor.u32 %v4437_v57, %v3408_v58  ;;  %v3667_v3 = vor.u32 %v4501_v62, %v3664_v22  ;;  %v3504_v27 = vld [vmem:[#allocation6 + $0x458] sm:$0xf0]  ;;  %v4577_v13 = vld [vmem:[#allocation9 + $0xe4] sm:$0xf0] }
  0xe6   :  { %1878 = vmatpush.bf16.msra.mxu3 %v3843_v31  ;;  %v3760_v31 = vld [vmem:[#allocation6 + $0x658] sm:$0xf0]  ;;  %v3507_v36 = vor.u32 %v4461_v24, %v3504_v27 }
  0xe7   :  { %1840 = vmatpush.bf16.msra.mxu0 %v3443_v39  ;;  %v5034_v25 = vpop.f32.mrf.mxu2  ;;  %v1590_v34 = vpop.f32.mrf.mxu0  ;;  %v4425_v39 = vld [vmem:[#allocation6 + $0x32c] sm:$0xf]  ;;  %v3728_v62 = vld [vmem:[#allocation6 + $0x618] sm:$0xf0] }
  0xe8   :  { %1853 = vmatpush.bf16.msra.mxu1 %v3571_v43  ;;  %v5036_v32 = vpop.f32.mrf.mxu3  ;;  %v1603_v35 = vpop.f32.mrf.mxu1  ;;  %v4457_v43 = vld [vmem:[#allocation6 + $0x42c] sm:$0xf]  ;;  %v3363_v50 = vor.u32 %v4425_v39, %v3360_v42  ;;  %v3731_v6 = vor.u32 %v4517_v61, %v3728_v62  ;;  %v4575_v24 = vld [vmem:[#allocation9 + $0xd4] sm:$0xf0]  ;;  %v3846_v61 = vld [vmem:[#allocation9] sm:$0xf] }
  0xe9   :  { %1866 = vmatpush.bf16.msra.mxu2 %v3699_v44  ;;  %v3763_v44 = vor.u32 %v4525_v30, %v3760_v31  ;;  %v3491_v52 = vor.u32 %v4457_v43, %v3488_v45  ;;  %v3951_v27 = vor.u32 %v4575_v24, %v3950_v23  ;;  %v3942_v30 = vld [vmem:[#allocation9 + $0xc0] sm:$0xf]  ;;  %v3870_v35 = vld [vmem:[#allocation9 + $0x30] sm:$0xf]  ;;  %v4549_v62 = vld [vmem:[#allocation9 + $0x4] sm:$0xf0] }
  0xea   :  { %1879 = vmatpush.bf16.msra.mxu3 %v3827_v48  ;;  %v4521_v48 = vld [vmem:[#allocation6 + $0x62c] sm:$0xf]  ;;  %v3862_v43 = vld [vmem:[#allocation9 + $0x20] sm:$0xf]  ;;  %v4558_v23 = vld [vmem:[#allocation9 + $0x54] sm:$0xf] }
  0xeb   :  { %1841 = vmatpush.bf16.msra.mxu0 %v3427_v54  ;;  %v3344_v54 = vld [vmem:[#allocation6 + $0x318] sm:$0xf0]  ;;  %v3747_v58 = vor.u32 %v4521_v48, %v3744_v49  ;;  %v375_v48 = vperm.slane %v5021_v15, 1  ;;  %v3888_v24 = vld [vmem:[#allocation9 + $0x58] sm:$0xf0] }
  0xec   :  { %1854 = vmatpush.bf16.msra.mxu1 %v3555_v55  ;;  %v4453_v55 = vld [vmem:[#allocation6 + $0x40c] sm:$0xf] }
  0xed   :  { %1867 = vmatpush.bf16.msra.mxu2 %v3683_v56  ;;  %v3472_v56 = vld [vmem:[#allocation6 + $0x418] sm:$0xf0] }
  0xee   :  { %1880 = vmatpush.bf16.msra.mxu3 %v3811_v60  ;;  %v3600_v60 = vld [vmem:[#allocation6 + $0x518] sm:$0xf0]  ;;  %v3475_v4 = vor.u32 %v4453_v55, %v3472_v56  ;;  %v3918_v55 = vld [vmem:[#allocation9 + $0x90] sm:$0xf] }
  0xef   :  { %1842 = vmatpush.bf16.msra.mxu0 %v3411_v18  ;;  %v1616_v57 = vpop.f32.mrf.mxu2  ;;  %v3347_v18 = vor.u32 %v4421_v51, %v3344_v54  ;;  %v3603_v5 = vor.u32 %v4485_v59, %v3600_v60  ;;  %v4551_v54 = vld [vmem:[#allocation9 + $0x14] sm:$0xf0] }
  0xf0   :  { %1855 = vmatpush.bf16.msra.mxu1 %v3539_v19  ;;  %v1629_v22 = vpop.f32.mrf.mxu3  ;;  %v3966_v19 = vld [vmem:[#allocation9 + $0xf0] sm:$0xf]  ;;  %v4567_v56 = vld [vmem:[#allocation9 + $0x94] sm:$0xf0]  ;;  %v1628_v57 = vadd.f32 %v5036_v32, %v375_v48 }
  0xf1   :  { %1868 = vmatpush.bf16.msra.mxu2 %v3667_v3  ;;  %v4579_v3 = vld [vmem:[#allocation9 + $0xf4] sm:$0xf0]  ;;  %v3919_v59 = vor.u32 %v4567_v56, %v3918_v55  ;;  %v3910_v22 = vld [vmem:[#allocation9 + $0x80] sm:$0xf] }
  0xf2   :  { %1881 = vmatpush.bf16.msra.mxu3 %v3795_v7  ;;  %v3903_v7 = vor.u32 %v4563_v0, %v3902_v63  ;;  %v3967_v8 = vor.u32 %v4579_v3, %v3966_v19  ;;  %v4565_v63 = vld [vmem:[#allocation9 + $0x84] sm:$0xf0]  ;;  %v3904_v19 = vld [vmem:[#allocation9 + $0x78] sm:$0xf0]  ;;  %v4578_v3 = vld [vmem:[#allocation9 + $0xf4] sm:$0xf] }
  0xf3   :  { %1843 = vmatpush.bf16.msra.mxu0 %v3395_v14  ;;  %v3895_v14 = vor.u32 %v4561_v10, %v3894_v9  ;;  %v4560_v9 = vld [vmem:[#allocation9 + $0x64] sm:$0xf]  ;;  %v3896_v10 = vld [vmem:[#allocation9 + $0x68] sm:$0xf0] }
  0xf4   :  { %1856 = vmatpush.bf16.msra.mxu1 %v3523_v16  ;;  %v3959_v16 = vor.u32 %v4577_v13, %v3958_v11  ;;  %v4576_v11 = vld [vmem:[#allocation9 + $0xe4] sm:$0xf]  ;;  %v3960_v13 = vld [vmem:[#allocation9 + $0xe8] sm:$0xf0] }
  0xf5   :  { %1869 = vmatpush.bf16.msra.mxu2 %v3651_v17  ;;  %v3886_v17 = vld [vmem:[#allocation9 + $0x50] sm:$0xf] }
  0xf6   :  { %1882 = vmatpush.bf16.msra.mxu3 %v3779_v26  ;;  %v3887_v26 = vor.u32 %v4559_v21, %v3886_v17  ;;  %v1589_v17 = vadd.f32 %v5030_v1, %v5024_v12  ;;  %v3963_v21 = vor.u32 %v4576_v11, %v3960_v13 }
  0xf7   :  { %1844 = vmatpush.bf16.msra.mxu0 %v3379_v33  ;;  %v3879_v33 = vor.u32 %v4557_v29, %v3878_v28  ;;  %v3891_v29 = vor.u32 %v4558_v23, %v3888_v24 }
  0xf8   :  { %1857 = vmatpush.bf16.msra.mxu1 %v3507_v36  ;;  %v3934_v36 = vld [vmem:[#allocation9 + $0xb0] sm:$0xf] }
  0xf9   :  { %1870 = vmatpush.bf16.msra.mxu2 %v3635_v38  ;;  %v4571_v38 = vld [vmem:[#allocation9 + $0xb4] sm:$0xf0] }
  0xfa   :  { %1883 = vmatpush.bf16.msra.mxu3 %v3763_v44  ;;  %v3935_v42 = vor.u32 %v4571_v38, %v3934_v36  ;;  %v4553_v44 = vld [vmem:[#allocation9 + $0x24] sm:$0xf0] }
  0xfb   :  { %1845 = vmatpush.bf16.msra.mxu0 %v3363_v50  ;;  %v3863_v50 = vor.u32 %v4553_v44, %v3862_v43  ;;  %v4570_v43 = vld [vmem:[#allocation9 + $0xb4] sm:$0xf] }
  0xfc   :  { %1858 = vmatpush.bf16.msra.mxu1 %v3491_v52  ;;  %v3927_v52 = vor.u32 %v4569_v47, %v3926_v46  ;;  %v376_v47 = vperm.slane %v5021_v15, 2 }
  0xfd   :  { %1871 = vmatpush.bf16.msra.mxu2 %v3619_v53  ;;  %v3854_v53 = vld [vmem:[#allocation9 + $0x10] sm:$0xf] }
  0xfe   :  { %1884 = vmatpush.bf16.msra.mxu3 %v3747_v58  ;;  %v3855_v58 = vor.u32 %v4551_v54, %v3854_v53  ;;  %v4568_v53 = vld [vmem:[#allocation9 + $0xa4] sm:$0xf]  ;;  %v3928_v54 = vld [vmem:[#allocation9 + $0xa8] sm:$0xf0] }
  0xff   :  { %1846 = vmatpush.bf16.msra.mxu0 %v3347_v18  ;;  %v1640_v31 = vpop.f32.mrf.mxu0  ;;  %v4562_v18 = vld [vmem:[#allocation9 + $0x74] sm:$0xf] }
 0x100   :  { %1859 = vmatpush.bf16.msra.mxu1 %v3475_v4  ;;  %v1653_v34 = vpop.f32.mrf.mxu1  ;;  %v3968_v4 = vld [vmem:[#allocation9 + $0xf8] sm:$0xf0]  ;;  %v3907_v32 = vor.u32 %v4562_v18, %v3904_v19 }
 0x101   :  { %1872 = vmatpush.bf16.msra.mxu2 %v3603_v5  ;;  %v1641_v5 = vadd.f32 %v1640_v31, %v1628_v57  ;;  %v4556_v31 = vld [vmem:[#allocation9 + $0x44] sm:$0xf] }
 0x102   :  { %1885 = vmatpush.bf16.msra.mxu3 %v3731_v6  ;;  %1847 = vmatmul.bf16.vlgmr.msra.gmra.mxu0 %v4991_v20  ;;  %v4573_v20 = vld [vmem:[#allocation9 + $0xc4] sm:$0xf0]  ;;  %v3847_v6 = vor.u32 %v4549_v62, %v3846_v61  ;;  %v4550_v61 = vld [vmem:[#allocation9 + $0x14] sm:$0xf]  ;;  %v3856_v62 = vld [vmem:[#allocation9 + $0x18] sm:$0xf0] }
 0x103   :  { %2305 = vmatpush.bf16.msrb.mxu0 %v3903_v7  ;;  %1860 = vmatmul.bf16.vlgmr.msra.gmra.mxu1 %v5001_v40  ;;  %v3943_v40 = vor.u32 %v4573_v20, %v3942_v30  ;;  %v3911_v7 = vor.u32 %v4565_v63, %v3910_v22  ;;  %v1602_v30 = vadd.f32 %v5032_v2, %v1589_v17  ;;  %v3936_v2 = vld [vmem:[#allocation9 + $0xb8] sm:$0xf0]  ;;  %v4030_v17 = vld [vmem:[#allocation9 + $0x170] sm:$0xf] }
 0x104   :  { %2318 = vmatpush.bf16.msrb.mxu1 %v3967_v8  ;;  %1873 = vmatmul.bf16.vlgmr.msra.gmra.mxu2 %v5003_v41  ;;  %v4555_v41 = vld [vmem:[#allocation9 + $0x34] sm:$0xf0]  ;;  %v3971_v8 = vor.u32 %v4578_v3, %v3968_v4  ;;  %v3931_v63 = vor.u32 %v4568_v53, %v3928_v54  ;;  %v4566_v3 = vld [vmem:[#allocation9 + $0x94] sm:$0xf]  ;;  %v3920_v4 = vld [vmem:[#allocation9 + $0x98] sm:$0xf0] }
 0x105   :  { %1886 = vmatmul.bf16.vlgmr.msra.gmra.mxu3 %v4999_v37  ;;  %v3871_v37 = vor.u32 %v4555_v41, %v3870_v35  ;;  %v1615_v1 = vadd.f32 %v5034_v25, %v1602_v30  ;;  %v4593_v30 = vld [vmem:[#allocation9 + $0x164] sm:$0xf0] }
 0x107   :  { %2306 = vmatpush.bf16.msrb.mxu0 %v3895_v14  ;;  %v1666_v39 = vpop.f32.mrf.mxu2  ;;  %v1642_v49 = vpop.f32.mrf.mxu0  ;;  %v1654_v14 = vadd.f32 %v1653_v34, %v1641_v5  ;;  %v4572_v34 = vld [vmem:[#allocation9 + $0xc4] sm:$0xf]  ;;  %v1891_v48 = vmax.f32 %v1615_v1, 0.0  ;;  %v3859_v5 = vor.u32 %v4550_v61, %v3856_v62  ;;  %v4591_v1 = vld [vmem:[#allocation9 + $0x154] sm:$0xf0] }
 0x108   :  { %2319 = vmatpush.bf16.msrb.mxu1 %v3959_v16  ;;  %v1679_v45 = vpop.f32.mrf.mxu3  ;;  %v1655_v51 = vpop.f32.mrf.mxu1  ;;  %v3899_v16 = vor.u32 %v4560_v9, %v3896_v10  ;;  %v3939_v49 = vor.u32 %v4570_v43, %v3936_v2  ;;  %v4564_v9 = vld [vmem:[#allocation9 + $0x84] sm:$0xf]  ;;  %v3912_v10 = vld [vmem:[#allocation9 + $0x88] sm:$0xf0]  ;;  %v4006_v43 = vld [vmem:[#allocation9 + $0x140] sm:$0xf] }
 0x109   :  { %v1667_v28 = vadd.f32 %v1666_v39, %v1654_v14  ;;  %v4554_v39 = vld [vmem:[#allocation9 + $0x34] sm:$0xf]  ;;  %v3864_v51 = vld [vmem:[#allocation9 + $0x28] sm:$0xf0]  ;;  %v3915_v14 = vor.u32 %v4564_v9, %v3912_v10  ;;  %v4589_v2 = vld [vmem:[#allocation9 + $0x144] sm:$0xf0] }
 0x10a   :  { %v3982_v61 = vld [vmem:[#allocation9 + $0x110] sm:$0xf]  ;;  %v4583_v62 = vld [vmem:[#allocation9 + $0x114] sm:$0xf0]  ;;  %v4032_v9 = vld [vmem:[#allocation9 + $0x178] sm:$0xf0] }
 0x10b   :  { %2307 = vmatpush.bf16.msrb.mxu0 %v3887_v26  ;;  %v4574_v26 = vld [vmem:[#allocation9 + $0xd4] sm:$0xf]  ;;  %v1680_v35 = vadd.f32 %v1679_v45, %v1667_v28 }
 0x10c   :  { %2320 = vmatpush.bf16.msrb.mxu1 %v3951_v27  ;;  %v3952_v27 = vld [vmem:[#allocation9 + $0xd8] sm:$0xf0] }
 0x10d   :  { %v3955_v20 = vor.u32 %v4574_v26, %v3952_v27  ;;  %v4094_v26 = vld [vmem:[#allocation9 + $0x1f0] sm:$0xf]  ;;  %v4611_v27 = vld [vmem:[#allocation9 + $0x1f4] sm:$0xf0] }
 0x10e   :  { %v4095_v28 = vor.u32 %v4611_v27, %v4094_v26  ;;  %v4024_v26 = vld [vmem:[#allocation9 + $0x168] sm:$0xf0]  ;;  %v4608_v27 = vld [vmem:[#allocation9 + $0x1e4] sm:$0xf] }
 0x10f   :  { %2308 = vmatpush.bf16.msrb.mxu0 %v3879_v33  ;;  %v1668_v60 = vpop.f32.mrf.mxu2  ;;  %v3880_v33 = vld [vmem:[#allocation9 + $0x48] sm:$0xf0] }
 0x110   :  { %2321 = vmatpush.bf16.msrb.mxu1 %v3943_v40  ;;  %v1681_v0 = vpop.f32.mrf.mxu3  ;;  %v3944_v40 = vld [vmem:[#allocation9 + $0xc8] sm:$0xf0]  ;;  %v3883_v12 = vor.u32 %v4556_v31, %v3880_v33  ;;  %2344 = vmatpush.bf16.msrb.mxu3 %v4095_v28 }
 0x113   :  { %2309 = vmatpush.bf16.msrb.mxu0 %v3871_v37  ;;  %v3947_v37 = vor.u32 %v4572_v34, %v3944_v40  ;;  %v4609_v34 = vld [vmem:[#allocation9 + $0x1e4] sm:$0xf0] }
 0x114   :  { %2322 = vmatpush.bf16.msrb.mxu1 %v3935_v42  ;;  %v3872_v42 = vld [vmem:[#allocation9 + $0x38] sm:$0xf0] }
 0x115   :  { %v3875_v46 = vor.u32 %v4554_v39, %v3872_v42  ;;  %v4607_v39 = vld [vmem:[#allocation9 + $0x1d4] sm:$0xf0] }
 0x117   :  { %2310 = vmatpush.bf16.msrb.mxu0 %v3863_v50  ;;  %v4552_v50 = vld [vmem:[#allocation9 + $0x24] sm:$0xf] }
 0x118   :  { %2323 = vmatpush.bf16.msrb.mxu1 %v3927_v52  ;;  %v3867_v56 = vor.u32 %v4552_v50, %v3864_v51 }
 0x11b   :  { %2311 = vmatpush.bf16.msrb.mxu0 %v3855_v58 }
 0x11c   :  { %2324 = vmatpush.bf16.msrb.mxu1 %v3919_v59 }
 0x11f   :  { %2312 = vmatpush.bf16.msrb.mxu0 %v3847_v6  ;;  %v1692_v41 = vpop.f32.mrf.mxu0  ;;  %v4548_v6 = vld [vmem:[#allocation9 + $0x4] sm:$0xf] }
 0x120   :  { %2325 = vmatpush.bf16.msrb.mxu1 %v3911_v7  ;;  %v1693_v36 = vadd.f32 %v1692_v41, %v1680_v35  ;;  %v1705_v38 = vpop.f32.mrf.mxu1  ;;  %v3848_v7 = vld [vmem:[#allocation9 + $0x8] sm:$0xf0] }
 0x121   :  { %v3851_v11 = vor.u32 %v4548_v6, %v3848_v7 }
 0x122   :  { %v1706_v44 = vadd.f32 %v1705_v38, %v1693_v36  ;;  %v4078_v36 = vld [vmem:[#allocation9 + $0x1d0] sm:$0xf] }
 0x123   :  { %2357 = vmatpush.bf16.msra.mxu0 %v3907_v32  ;;  %v3923_v32 = vor.u32 %v4566_v3, %v3920_v4  ;;  %v4079_v42 = vor.u32 %v4607_v39, %v4078_v36  ;;  %v3974_v3 = vld [vmem:[#allocation9 + $0x100] sm:$0xf]  ;;  %v4581_v4 = vld [vmem:[#allocation9 + $0x104] sm:$0xf0]  ;;  %v4080_v36 = vld [vmem:[#allocation9 + $0x1d8] sm:$0xf0] }
 0x124   :  { %2370 = vmatpush.bf16.msra.mxu1 %v3971_v8  ;;  %v1892_v45 = vmax.f32 %v1706_v44, 0.0  ;;  %v4070_v44 = vld [vmem:[#allocation9 + $0x1c0] sm:$0xf]  ;;  %v3975_v7 = vor.u32 %v4581_v4, %v3974_v3  ;;  %v4588_v39 = vld [vmem:[#allocation9 + $0x144] sm:$0xf] }
 0x125   :  { %v4580_v3 = vld [vmem:[#allocation9 + $0x104] sm:$0xf]  ;;  %v3976_v4 = vld [vmem:[#allocation9 + $0x108] sm:$0xf0] }
 0x126   :  { %v1895_v25 = vpack.c.bf16 %v1892_v45, %v1891_v48  ;;  %v4605_v48 = vld [vmem:[#allocation9 + $0x1c4] sm:$0xf0]  ;;  %v3998_v45 = vld [vmem:[#allocation9 + $0x130] sm:$0xf] }
 0x127   :  { %2358 = vmatpush.bf16.msra.mxu0 %v3899_v16  ;;  %v1718_v52 = vpop.f32.mrf.mxu2  ;;  %v1694_v58 = vpop.f32.mrf.mxu0  ;;  %v4071_v51 = vor.u32 %v4605_v48, %v4070_v44  ;;  %v4072_v44 = vld [vmem:[#allocation9 + $0x1c8] sm:$0xf0] }
 0x128   :  { %2371 = vmatpush.bf16.msra.mxu1 %v3963_v21  ;;  %v1719_v55 = vadd.f32 %v1718_v52, %v376_v47  ;;  %v1731_v57 = vpop.f32.mrf.mxu3  ;;  %v1973_v59 = vunpack.c.l.b16 %v1895_v25  ;;  %v1974_v60 = vunpack.c.h.b16 %v1895_v25  ;;  %v1707_v22 = vpop.f32.mrf.mxu1  ;;  %v4595_v21 = vld [vmem:[#allocation9 + $0x174] sm:$0xf0]  ;;  %v4007_v47 = vor.u32 %v4589_v2, %v4006_v43  ;;  %v4062_v25 = vld [vmem:[#allocation9 + $0x1b0] sm:$0xf]  ;;  %v4604_v43 = vld [vmem:[#allocation9 + $0x1c4] sm:$0xf] }
 0x129   :  { %v4031_v24 = vor.u32 %v4595_v21, %v4030_v17  ;;  %v4603_v52 = vld [vmem:[#allocation9 + $0x1b4] sm:$0xf0]  ;;  %v4046_v22 = vld [vmem:[#allocation9 + $0x190] sm:$0xf] }
 0x12a   :  { %v5049_v0 = vadd.f32 %v1731_v57, %v1719_v55  ;;  %v1977_v18 = vpack.c.b16 %v1973_v59, %v1973_v59  ;;  %v1978_v19 = vpack.c.b16 %v1974_v60, %v1974_v60  ;;  %v4063_v54 = vor.u32 %v4603_v52, %v4062_v25  ;;  %v3990_v55 = vld [vmem:[#allocation9 + $0x120] sm:$0xf]  ;;  %v4601_v59 = vld [vmem:[#allocation9 + $0x1a4] sm:$0xf0]  ;;  %v4064_v52 = vld [vmem:[#allocation9 + $0x1b8] sm:$0xf0] }
 0x12b   :  { %2359 = vmatpush.bf16.msra.mxu0 %v3891_v29  ;;  %2331 = vmatpush.bf16.msrb.mxu2 %v4031_v24  ;;  %v4022_v29 = vld [vmem:[#allocation9 + $0x160] sm:$0xf]  ;;  %v4592_v24 = vld [vmem:[#allocation9 + $0x164] sm:$0xf] }
 0x12c   :  { %2372 = vmatpush.bf16.msra.mxu1 %v3955_v20  ;;  %2313 = vmatmul.bf16.vlgmr.msrb.gmra.mxu0 %v1977_v18  ;;  %v4086_v20 = vld [vmem:[#allocation9 + $0x1e0] sm:$0xf]  ;;  %v4023_v33 = vor.u32 %v4593_v30, %v4022_v29  ;;  %v4027_v28 = vor.u32 %v4592_v24, %v4024_v26  ;;  %v4088_v29 = vld [vmem:[#allocation9 + $0x1e8] sm:$0xf0] }
 0x12d   :  { %2326 = vmatmul.bf16.vlgmr.msrb.gmra.mxu1 %v1978_v19  ;;  %v4087_v35 = vor.u32 %v4609_v34, %v4086_v20  ;;  %v4054_v57 = vld [vmem:[#allocation9 + $0x1a0] sm:$0xf]  ;;  %v4091_v30 = vor.u32 %v4608_v27, %v4088_v29 }
 0x12e   :  { %v4055_v60 = vor.u32 %v4601_v59, %v4054_v57  ;;  %v4056_v57 = vld [vmem:[#allocation9 + $0x1a8] sm:$0xf0] }
 0x12f   :  { %2360 = vmatpush.bf16.msra.mxu0 %v3883_v12  ;;  %v1720_v8 = vpop.f32.mrf.mxu2  ;;  %2332 = vmatpush.bf16.msrb.mxu2 %v4023_v33  ;;  %v4014_v12 = vld [vmem:[#allocation9 + $0x150] sm:$0xf] }
 0x130   :  { %2373 = vmatpush.bf16.msra.mxu1 %v3947_v37  ;;  %v1733_v13 = vpop.f32.mrf.mxu3  ;;  %2345 = vmatpush.bf16.msrb.mxu3 %v4087_v35  ;;  %v4015_v37 = vor.u32 %v4591_v1, %v4014_v12  ;;  %v4594_v8 = vld [vmem:[#allocation9 + $0x174] sm:$0xf] }
 0x131   :  { %v4610_v13 = vld [vmem:[#allocation9 + $0x1f4] sm:$0xf] }
 0x132   :  { %v4590_v35 = vld [vmem:[#allocation9 + $0x154] sm:$0xf] }
 0x133   :  { %2361 = vmatpush.bf16.msra.mxu0 %v3875_v46  ;;  %2333 = vmatpush.bf16.msrb.mxu2 %v4015_v37  ;;  %v4606_v12 = vld [vmem:[#allocation9 + $0x1d4] sm:$0xf] }
 0x134   :  { %2374 = vmatpush.bf16.msra.mxu1 %v3939_v49  ;;  %2346 = vmatpush.bf16.msrb.mxu3 %v4079_v42  ;;  %v4587_v49 = vld [vmem:[#allocation9 + $0x134] sm:$0xf0]  ;;  %v4083_v37 = vor.u32 %v4606_v12, %v4080_v36  ;;  %v4008_v42 = vld [vmem:[#allocation9 + $0x148] sm:$0xf0] }
 0x135   :  { %v3999_v53 = vor.u32 %v4587_v49, %v3998_v45  ;;  %v4011_v2 = vor.u32 %v4588_v39, %v4008_v42  ;;  %v4586_v49 = vld [vmem:[#allocation9 + $0x134] sm:$0xf] }
 0x137   :  { %2362 = vmatpush.bf16.msra.mxu0 %v3867_v56  ;;  %2334 = vmatpush.bf16.msrb.mxu2 %v4007_v47  ;;  %v4585_v56 = vld [vmem:[#allocation9 + $0x124] sm:$0xf0]  ;;  %v377_v47 = vperm.slane %v5021_v15, 3  ;;  %v3984_v15 = vld [vmem:[#allocation9 + $0x118] sm:$0xf0] }
 0x138   :  { %2375 = vmatpush.bf16.msra.mxu1 %v3931_v63  ;;  %2347 = vmatpush.bf16.msrb.mxu3 %v4071_v51  ;;  %v3991_v58 = vor.u32 %v4585_v56, %v3990_v55  ;;  %v3983_v63 = vor.u32 %v4583_v62, %v3982_v61  ;;  %v4602_v51 = vld [vmem:[#allocation9 + $0x1b4] sm:$0xf]  ;;  %v4600_v56 = vld [vmem:[#allocation9 + $0x1a4] sm:$0xf] }
 0x139   :  { %v4067_v55 = vor.u32 %v4602_v51, %v4064_v52  ;;  %v4059_v59 = vor.u32 %v4600_v56, %v4056_v57  ;;  %v4598_v62 = vld [vmem:[#allocation9 + $0x194] sm:$0xf]  ;;  %v4158_v51 = vld [vmem:[#allocation11 + $0x70] sm:$0xf]  ;;  %v4160_v56 = vld [vmem:[#allocation11 + $0x78] sm:$0xf0] }
 0x13a   :  { %v4222_v52 = vld [vmem:[#allocation11 + $0xf0] sm:$0xf] }
 0x13b   :  { %2363 = vmatpush.bf16.msra.mxu0 %v3859_v5  ;;  %2335 = vmatpush.bf16.msrb.mxu2 %v3999_v53  ;;  %v4038_v5 = vld [vmem:[#allocation9 + $0x180] sm:$0xf]  ;;  %v4584_v53 = vld [vmem:[#allocation9 + $0x124] sm:$0xf] }
 0x13c   :  { %2376 = vmatpush.bf16.msra.mxu1 %v3923_v32  ;;  %2348 = vmatpush.bf16.msrb.mxu3 %v4063_v54  ;;  %v4597_v32 = vld [vmem:[#allocation9 + $0x184] sm:$0xf0]  ;;  %v3992_v54 = vld [vmem:[#allocation9 + $0x128] sm:$0xf0] }
 0x13d   :  { %v4039_v10 = vor.u32 %v4597_v32, %v4038_v5  ;;  %v4040_v32 = vld [vmem:[#allocation9 + $0x188] sm:$0xf0] }
 0x13f   :  { %2364 = vmatpush.bf16.msra.mxu0 %v3851_v11  ;;  %v5051_v16 = vpop.f32.mrf.mxu0  ;;  %2336 = vmatpush.bf16.msrb.mxu2 %v3991_v58  ;;  %v4035_v11 = vor.u32 %v4594_v8, %v4032_v9  ;;  %v3995_v58 = vor.u32 %v4584_v53, %v3992_v54  ;;  %v3979_v9 = vor.u32 %v4580_v3, %v3976_v4  ;;  %v4643_v54 = vld [vmem:[#allocation11 + $0xf4] sm:$0xf0]  ;;  %v4152_v3 = vld [vmem:[#allocation11 + $0x68] sm:$0xf0] }
 0x140   :  { %2377 = vmatpush.bf16.msra.mxu1 %v3915_v14  ;;  %v5053_v23 = vpop.f32.mrf.mxu1  ;;  %2349 = vmatpush.bf16.msrb.mxu3 %v4055_v60  ;;  %v4096_v14 = vld [vmem:[#allocation9 + $0x1f8] sm:$0xf0]  ;;  %v4582_v60 = vld [vmem:[#allocation9 + $0x114] sm:$0xf]  ;;  %v4223_v57 = vor.u32 %v4643_v54, %v4222_v52  ;;  %v4633_v52 = vld [vmem:[#allocation11 + $0xa4] sm:$0xf0] }
 0x141   :  { %v4099_v21 = vor.u32 %v4610_v13, %v4096_v14  ;;  %v4120_v54 = vld [vmem:[#allocation11 + $0x28] sm:$0xf0] }
 0x142   :  { %2365 = vmatmul.bf16.vlgmr.msra.gmra.mxu0 %v1977_v18  ;;  %v4599_v18 = vld [vmem:[#allocation9 + $0x194] sm:$0xf0] }
 0x143   :  { %2378 = vmatmul.bf16.vlgmr.msra.gmra.mxu1 %v1978_v19  ;;  %v4047_v19 = vor.u32 %v4599_v18, %v4046_v22  ;;  %2337 = vmatpush.bf16.msrb.mxu2 %v3983_v63  ;;  %v4048_v22 = vld [vmem:[#allocation9 + $0x198] sm:$0xf0]  ;;  %v1745_v63 = vadd.f32 %v5051_v16, %v5049_v0  ;;  %v3987_v18 = vor.u32 %v4582_v60, %v3984_v15 }
 0x144   :  { %v4224_v60 = vld [vmem:[#allocation11 + $0xf8] sm:$0xf0]  ;;  %2632 = vmatpush.bf16.msrb.mxu1 %v4223_v57  ;;  %v4632_v57 = vld [vmem:[#allocation11 + $0xa4] sm:$0xf] }
 0x145   :  { %2350 = vmatpush.bf16.msrb.mxu3 %v4047_v19  ;;  %v4051_v19 = vor.u32 %v4598_v62, %v4048_v22  ;;  %v1758_v8 = vadd.f32 %v5053_v23, %v1745_v63  ;;  %v4625_v62 = vld [vmem:[#allocation11 + $0x64] sm:$0xf0]  ;;  %v4214_v22 = vld [vmem:[#allocation11 + $0xe0] sm:$0xf] }
 0x147   :  { %v5055_v31 = vpop.f32.mrf.mxu2  ;;  %v1746_v41 = vpop.f32.mrf.mxu0  ;;  %2338 = vmatpush.bf16.msrb.mxu2 %v3975_v7  ;;  %v4596_v7 = vld [vmem:[#allocation9 + $0x184] sm:$0xf] }
 0x148   :  { %v5057_v40 = vpop.f32.mrf.mxu3  ;;  %v1759_v38 = vpop.f32.mrf.mxu1  ;;  %v4016_v41 = vld [vmem:[#allocation9 + $0x158] sm:$0xf0]  ;;  %v1771_v0 = vadd.f32 %v5055_v31, %v1758_v8 }
 0x149   :  { %2351 = vmatpush.bf16.msrb.mxu3 %v4039_v10  ;;  %v4019_v1 = vor.u32 %v4590_v35, %v4016_v41  ;;  %v4043_v10 = vor.u32 %v4596_v7, %v4040_v32  ;;  %v4640_v7 = vld [vmem:[#allocation11 + $0xe4] sm:$0xf]  ;;  %v4216_v32 = vld [vmem:[#allocation11 + $0xe8] sm:$0xf0] }
 0x14a   :  { %v4219_v8 = vor.u32 %v4640_v7, %v4216_v32  ;;  %v4102_v32 = vld [vmem:[#allocation11] sm:$0xf] }
 0x14b   :  { %2383 = vmatpush.bf16.msra.mxu2 %v4035_v11 }
 0x14d   :  { %2396 = vmatpush.bf16.msra.mxu3 %v4099_v21 }
 0x14f   :  { %v1772_v46 = vpop.f32.mrf.mxu2  ;;  %2384 = vmatpush.bf16.msra.mxu2 %v4027_v28 }
 0x150   :  { %v1785_v50 = vpop.f32.mrf.mxu3  ;;  %v4075_v46 = vor.u32 %v4604_v43, %v4072_v44 }
 0x151   :  { %2397 = vmatpush.bf16.msra.mxu3 %v4091_v30  ;;  %v4000_v50 = vld [vmem:[#allocation9 + $0x138] sm:$0xf0] }
 0x152   :  { %v4003_v25 = vor.u32 %v4586_v49, %v4000_v50 }
 0x153   :  { %2385 = vmatpush.bf16.msra.mxu2 %v4019_v1 }
 0x155   :  { %2398 = vmatpush.bf16.msra.mxu3 %v4083_v37 }
 0x157   :  { %2386 = vmatpush.bf16.msra.mxu2 %v4011_v2 }
 0x159   :  { %2399 = vmatpush.bf16.msra.mxu3 %v4075_v46 }
 0x15b   :  { %2387 = vmatpush.bf16.msra.mxu2 %v4003_v25  ;;  %v4627_v25 = vld [vmem:[#allocation11 + $0x74] sm:$0xf0] }
 0x15c   :  { %v4159_v53 = vor.u32 %v4627_v25, %v4158_v51  ;;  %v4182_v51 = vld [vmem:[#allocation11 + $0xa0] sm:$0xf] }
 0x15d   :  { %2400 = vmatpush.bf16.msra.mxu3 %v4067_v55  ;;  %v4626_v55 = vld [vmem:[#allocation11 + $0x74] sm:$0xf] }
 0x15e   :  { %2619 = vmatpush.bf16.msrb.mxu0 %v4159_v53  ;;  %v4616_v53 = vld [vmem:[#allocation11 + $0x24] sm:$0xf] }
 0x15f   :  { %v5059_v6 = vpop.f32.mrf.mxu0  ;;  %2388 = vmatpush.bf16.msra.mxu2 %v3995_v58  ;;  %v4163_v58 = vor.u32 %v4626_v55, %v4160_v56  ;;  %v4183_v55 = vor.u32 %v4633_v52, %v4182_v51  ;;  %v4123_v56 = vor.u32 %v4616_v53, %v4120_v54  ;;  %v4654_v51 = vld [vmem:[#allocation12 + $0x50] sm:$0xff]  ;;  %v4653_v52 = vld [vmem:[#allocation12 + $0x48] sm:$0xff]  ;;  %v4644_v53 = vld [vmem:[#allocation12] sm:$0xff] }
 0x160   :  { %v1809_v17 = vpop.f32.mrf.mxu1  ;;  %v4652_v54 = vld [vmem:[#allocation12 + $0x40] sm:$0xff] }
 0x161   :  { %v1810_v61 = vadd.f32 %v1809_v17, %v377_v47  ;;  %2401 = vmatpush.bf16.msra.mxu3 %v4059_v59  ;;  %v1784_v17 = vadd.f32 %v5057_v40, %v1771_v0  ;;  %v1965_v40 = vld [vmem:[%s5093_s4] sm:$0x3]  ;;  %v4642_v59 = vld [vmem:[#allocation11 + $0xf4] sm:$0xf] }
 0x162   :  { %v1968_v44 = vperm.slane %v1965_v40, 1  ;;  %v4227_v15 = vor.u32 %v4642_v59, %v4224_v60  ;;  %v4622_v0 = vld [vmem:[#allocation11 + $0x54] sm:$0xf]  ;;  %v4110_v60 = vld [vmem:[#allocation11 + $0x10] sm:$0xf] }
 0x163   :  { %2389 = vmatpush.bf16.msra.mxu2 %v3987_v18  ;;  %v1797_v26 = vadd.f32 %v5059_v6, %v1784_v17  ;;  %v1967_v6 = vperm.slane %v1965_v40, 0  ;;  %v4641_v18 = vld [vmem:[#allocation11 + $0xe4] sm:$0xf0]  ;;  %v4619_v40 = vld [vmem:[#allocation11 + $0x34] sm:$0xf0] }
 0x164   :  { %v4215_v4 = vor.u32 %v4641_v18, %v4214_v22  ;;  %v4631_v22 = vld [vmem:[#allocation11 + $0x94] sm:$0xf0]  ;;  %v4112_v18 = vld [vmem:[#allocation11 + $0x18] sm:$0xf0] }
 0x165   :  { %2402 = vmatpush.bf16.msra.mxu3 %v4051_v19  ;;  %v4624_v19 = vld [vmem:[#allocation11 + $0x64] sm:$0xf] }
 0x166   :  { %2633 = vmatpush.bf16.msrb.mxu1 %v4215_v4  ;;  %v4630_v4 = vld [vmem:[#allocation11 + $0x94] sm:$0xf] }
 0x167   :  { %v1822_v20 = vpop.f32.mrf.mxu2  ;;  %v1798_v34 = vpop.f32.mrf.mxu0  ;;  %2390 = vmatpush.bf16.msra.mxu2 %v3979_v9  ;;  %v4142_v9 = vld [vmem:[#allocation11 + $0x50] sm:$0xf] }
 0x168   :  { %v1835_v33 = vpop.f32.mrf.mxu3  ;;  %v1811_v38 = vpop.f32.mrf.mxu1  ;;  %v1823_v5 = vadd.f32 %v1822_v20, %v1810_v61  ;;  %v1893_v20 = vmax.f32 %v1797_v26, 0.0  ;;  %v4150_v61 = vld [vmem:[#allocation11 + $0x60] sm:$0xf]  ;;  %v4208_v26 = vld [vmem:[#allocation11 + $0xd8] sm:$0xf0] }
 0x169   :  { %2403 = vmatpush.bf16.msra.mxu3 %v4043_v10  ;;  %v4151_v63 = vor.u32 %v4625_v62, %v4150_v61  ;;  %v4623_v10 = vld [vmem:[#allocation11 + $0x54] sm:$0xf0]  ;;  %v4174_v61 = vld [vmem:[#allocation11 + $0x90] sm:$0xf] }
 0x16a   :  { %v1836_v11 = vadd.f32 %v1835_v33, %v1823_v5  ;;  %v4155_v5 = vor.u32 %v4624_v19, %v4152_v3  ;;  %v4175_v19 = vor.u32 %v4631_v22, %v4174_v61 }
 0x16b   :  { %2620 = vmatpush.bf16.msrb.mxu0 %v4151_v63  ;;  %v4614_v63 = vld [vmem:[#allocation11 + $0x14] sm:$0xf] }
 0x16c   :  { %v4115_v3 = vor.u32 %v4614_v63, %v4112_v18 }
 0x16f   :  { %v1824_v48 = vpop.f32.mrf.mxu2 }
 0x170   :  { %v1837_v45 = vpop.f32.mrf.mxu3 }
 0x17f   :  { %v1848_v13 = vpop.f32.mrf.mxu0 }
 0x180   :  { %v1861_v14 = vpop.f32.mrf.mxu1  ;;  %v1849_v16 = vadd.f32 %v1848_v13, %v1836_v11  ;;  %v4206_v11 = vld [vmem:[#allocation11 + $0xd0] sm:$0xf]  ;;  %v4143_v13 = vor.u32 %v4623_v10, %v4142_v9  ;;  %v4166_v9 = vld [vmem:[#allocation11 + $0x80] sm:$0xf] }
 0x182   :  { %v1862_v21 = vadd.f32 %v1861_v14, %v1849_v16  ;;  %v4639_v14 = vld [vmem:[#allocation11 + $0xd4] sm:$0xf0]  ;;  %v4144_v16 = vld [vmem:[#allocation11 + $0x58] sm:$0xf0]  ;;  %2621 = vmatpush.bf16.msrb.mxu0 %v4143_v13  ;;  %v4612_v13 = vld [vmem:[#allocation11 + $0x4] sm:$0xf] }
 0x183   :  { %v4207_v17 = vor.u32 %v4639_v14, %v4206_v11  ;;  %v4629_v11 = vld [vmem:[#allocation11 + $0x84] sm:$0xf0]  ;;  %v4104_v14 = vld [vmem:[#allocation11 + $0x8] sm:$0xf0] }
 0x185   :  { %2634 = vmatpush.bf16.msrb.mxu1 %v4207_v17  ;;  %v4628_v17 = vld [vmem:[#allocation11 + $0x84] sm:$0xf] }
 0x187   :  { %v1874_v24 = vpop.f32.mrf.mxu2  ;;  %v1850_v28 = vpop.f32.mrf.mxu0 }
 0x188   :  { %v1875_v27 = vadd.f32 %v1874_v24, %v1862_v21  ;;  %v1887_v23 = vpop.f32.mrf.mxu3  ;;  %v1863_v29 = vpop.f32.mrf.mxu1  ;;  %v4147_v21 = vor.u32 %v4622_v0, %v4144_v16  ;;  %v4638_v24 = vld [vmem:[#allocation11 + $0xd4] sm:$0xf]  ;;  %v4621_v28 = vld [vmem:[#allocation11 + $0x44] sm:$0xf0]  ;;  %v4167_v0 = vor.u32 %v4629_v11, %v4166_v9  ;;  %v4107_v16 = vor.u32 %v4612_v13, %v4104_v14 }
 0x189   :  { %v4198_v29 = vld [vmem:[#allocation11 + $0xc0] sm:$0xf] }
 0x18a   :  { %v1888_v30 = vadd.f32 %v1887_v23, %v1875_v27  ;;  %v4211_v27 = vor.u32 %v4638_v24, %v4208_v26  ;;  %v4134_v23 = vld [vmem:[#allocation11 + $0x40] sm:$0xf]  ;;  %v4651_v26 = vld [vmem:[#allocation12 + $0x38] sm:$0xff] }
 0x18c   :  { %v1894_v33 = vmax.f32 %v1888_v30, 0.0  ;;  %v4135_v30 = vor.u32 %v4621_v28, %v4134_v23 }
 0x18e   :  { %v1896_v34 = vpack.c.bf16 %v1894_v33, %v1893_v20  ;;  %v4637_v20 = vld [vmem:[#allocation11 + $0xc4] sm:$0xf0]  ;;  %v4620_v33 = vld [vmem:[#allocation11 + $0x44] sm:$0xf]  ;;  %2622 = vmatpush.bf16.msrb.mxu0 %v4135_v30 }
 0x18f   :  { %v1876_v35 = vpop.f32.mrf.mxu2 }
 0x190   :  { %v1889_v41 = vpop.f32.mrf.mxu3  ;;  %v1975_v31 = vunpack.c.l.b16 %v1896_v34  ;;  %v1976_v12 = vunpack.c.h.b16 %v1896_v34  ;;  %v4136_v34 = vld [vmem:[#allocation11 + $0x48] sm:$0xf0]  ;;  %v4199_v35 = vor.u32 %v4637_v20, %v4198_v29 }
 0x191   :  { %v4139_v41 = vor.u32 %v4620_v33, %v4136_v34 }
 0x192   :  { %v1979_v1 = vpack.c.b16 %v1975_v31, %v1975_v31  ;;  %v1980_v36 = vpack.c.b16 %v1976_v12, %v1976_v12  ;;  %v4636_v31 = vld [vmem:[#allocation11 + $0xc4] sm:$0xf]  ;;  %v4200_v12 = vld [vmem:[#allocation11 + $0xc8] sm:$0xf0]  ;;  %2635 = vmatpush.bf16.msrb.mxu1 %v4199_v35 }
 0x194   :  { %2339 = vmatmul.bf16.vlgmr.msrb.gmra.mxu2 %v1979_v1  ;;  %2352 = vmatmul.bf16.vlgmr.msrb.gmra.mxu3 %v1980_v36 }
 0x195   :  { %2645 = vmatpush.bf16.msrb.mxu2 %v4163_v58  ;;  %2658 = vmatpush.bf16.msrb.mxu3 %v4227_v15  ;;  %v4184_v58 = vld [vmem:[#allocation11 + $0xa8] sm:$0xf0]  ;;  %v4615_v15 = vld [vmem:[#allocation11 + $0x14] sm:$0xf0] }
 0x196   :  { %v4187_v59 = vor.u32 %v4632_v57, %v4184_v58  ;;  %v4111_v62 = vor.u32 %v4615_v15, %v4110_v60  ;;  %v4665_v57 = vld [vmem:[#allocation14 + $0x28] sm:$0xff]  ;;  %v2446_v58 = vld [vmem:[%s5095_s6] sm:$0x3] }
 0x197   :  { %v2448_v60 = vperm.slane %v2446_v58, 0  ;;  %v2449_v22 = vperm.slane %v2446_v58, 1 }
 0x199   :  { %2646 = vmatpush.bf16.msrb.mxu2 %v4155_v5  ;;  %2659 = vmatpush.bf16.msrb.mxu3 %v4219_v8  ;;  %v4176_v5 = vld [vmem:[#allocation11 + $0x98] sm:$0xf0]  ;;  %v4613_v8 = vld [vmem:[#allocation11 + $0x4] sm:$0xf0] }
 0x19a   :  { %v4179_v7 = vor.u32 %v4630_v4, %v4176_v5  ;;  %v4103_v10 = vor.u32 %v4613_v8, %v4102_v32 }
 0x19d   :  { %2647 = vmatpush.bf16.msrb.mxu2 %v4147_v21  ;;  %2660 = vmatpush.bf16.msrb.mxu3 %v4211_v27  ;;  %v4168_v21 = vld [vmem:[#allocation11 + $0x88] sm:$0xf0]  ;;  %v4659_v27 = vld [vmem:[#allocation12 + $0x78] sm:$0xff] }
 0x19e   :  { %v4171_v24 = vor.u32 %v4628_v17, %v4168_v21  ;;  %v4663_v17 = vld [vmem:[#allocation14 + $0x18] sm:$0xff]  ;;  %v4662_v21 = vld [vmem:[#allocation14 + $0x10] sm:$0xff] }
 0x1a1   :  { %2648 = vmatpush.bf16.msrb.mxu2 %v4139_v41 }
 0x1a4   :  { %2391 = vmatmul.bf16.vlgmr.msra.gmra.mxu2 %v1979_v1  ;;  %2404 = vmatmul.bf16.vlgmr.msra.gmra.mxu3 %v1980_v36  ;;  %v4203_v1 = vor.u32 %v4636_v31, %v4200_v12  ;;  %v4126_v36 = vld [vmem:[#allocation11 + $0x30] sm:$0xf] }
 0x1a6   :  { %2661 = vmatpush.bf16.msrb.mxu3 %v4203_v1 }
 0x1a9   :  { %v2314_v38 = vpop.f32.mrf.mxu0 }
 0x1aa   :  { %v2327_v37 = vpop.f32.mrf.mxu1  ;;  %v2315_v39 = vadd.f32 %v2314_v38, %v1967_v6  ;;  %v4190_v6 = vld [vmem:[#allocation11 + $0xb0] sm:$0xf]  ;;  %v4127_v38 = vor.u32 %v4619_v40, %v4126_v36 }
 0x1ac   :  { %v5071_v42 = vadd.f32 %v2327_v37, %v2315_v39  ;;  %v4635_v37 = vld [vmem:[#allocation11 + $0xb4] sm:$0xf0]  ;;  %v4618_v39 = vld [vmem:[#allocation11 + $0x34] sm:$0xf]  ;;  %2623 = vmatpush.bf16.msrb.mxu0 %v4127_v38 }
 0x1b1   :  { %v2316_v43 = vpop.f32.mrf.mxu0 }
 0x1b2   :  { %v2329_v2 = vpop.f32.mrf.mxu1  ;;  %v4128_v43 = vld [vmem:[#allocation11 + $0x38] sm:$0xf0] }
 0x1b3   :  { %v4191_v2 = vor.u32 %v4635_v37, %v4190_v6 }
 0x1b5   :  { %2636 = vmatpush.bf16.msrb.mxu1 %v4191_v2  ;;  %v4658_v2 = vld [vmem:[#allocation12 + $0x70] sm:$0xff] }
 0x1b9   :  { %2637 = vmatpush.bf16.msrb.mxu1 %v4183_v55  ;;  %v4667_v55 = vld [vmem:[#allocation14 + $0x38] sm:$0xff] }
 0x1bd   :  { %2638 = vmatpush.bf16.msrb.mxu1 %v4175_v19 }
 0x1bf   :  { %v2366_v46 = vpop.f32.mrf.mxu0 }
 0x1c0   :  { %v2379_v47 = vpop.f32.mrf.mxu1  ;;  %v2367_v48 = vadd.f32 %v2366_v46, %v1968_v44  ;;  %v4131_v44 = vor.u32 %v4618_v39, %v4128_v43  ;;  %v4634_v46 = vld [vmem:[#allocation11 + $0xb4] sm:$0xf] }
 0x1c1   :  { %2639 = vmatpush.bf16.msrb.mxu1 %v4167_v0 }
 0x1c2   :  { %v5073_v45 = vadd.f32 %v2379_v47, %v2367_v48  ;;  %v4192_v47 = vld [vmem:[#allocation11 + $0xb8] sm:$0xf0]  ;;  %2649 = vmatpush.bf16.msrb.mxu2 %v4131_v44  ;;  %v4649_v44 = vld [vmem:[#allocation12 + $0x28] sm:$0xff] }
 0x1c3   :  { %v4195_v48 = vor.u32 %v4634_v46, %v4192_v47  ;;  %v4648_v46 = vld [vmem:[#allocation12 + $0x20] sm:$0xff] }
 0x1c4   :  { %v4656_v47 = vld [vmem:[#allocation12 + $0x60] sm:$0xff] }
 0x1c5   :  { %2662 = vmatpush.bf16.msrb.mxu3 %v4195_v48  ;;  %2828 = vmatpush.bf16.msra.mxu1 %v4659_v27  ;;  %v4647_v48 = vld [vmem:[#allocation12 + $0x18] sm:$0xff]  ;;  %v4682_v27 = vld [vmem:[%s5097_s8] ss:$0 sm:$0xff] }
 0x1c6   :  { %2650 = vmatpush.bf16.msrb.mxu2 %v4123_v56  ;;  %v4666_v56 = vld [vmem:[#allocation14 + $0x30] sm:$0xff] }
 0x1c7   :  { %v2368_v49 = vpop.f32.mrf.mxu0 }
 0x1c8   :  { %v2381_v50 = vpop.f32.mrf.mxu1  ;;  %v4118_v49 = vld [vmem:[#allocation11 + $0x20] sm:$0xf] }
 0x1c9   :  { %v4617_v50 = vld [vmem:[#allocation11 + $0x24] sm:$0xf0]  ;;  %2663 = vmatpush.bf16.msrb.mxu3 %v4187_v59  ;;  %2829 = vmatpush.bf16.msra.mxu1 %v4658_v2  ;;  %v4664_v59 = vld [vmem:[#allocation14 + $0x20] sm:$0xff] }
 0x1ca   :  { %v4119_v25 = vor.u32 %v4617_v50, %v4118_v49  ;;  %2651 = vmatpush.bf16.msrb.mxu2 %v4115_v3  ;;  %v4655_v49 = vld [vmem:[#allocation12 + $0x58] sm:$0xff]  ;;  %v4646_v50 = vld [vmem:[#allocation12 + $0x10] sm:$0xff] }
 0x1cc   :  { %2624 = vmatpush.bf16.msrb.mxu0 %v4119_v25  ;;  %v4645_v25 = vld [vmem:[#allocation12 + $0x8] sm:$0xff] }
 0x1cd   :  { %2664 = vmatpush.bf16.msrb.mxu3 %v4179_v7 }
 0x1ce   :  { %2652 = vmatpush.bf16.msrb.mxu2 %v4107_v16 }
 0x1d0   :  { %2625 = vmatpush.bf16.msrb.mxu0 %v4111_v62 }
 0x1d1   :  { %2665 = vmatpush.bf16.msrb.mxu3 %v4171_v24  ;;  %v4661_v24 = vld [vmem:[#allocation14 + $0x8] sm:$0xff] }
 0x1d2   :  { %2913 = vmatpush.bf16.msra.mxu2 %v4667_v55 }
 0x1d4   :  { %2626 = vmatpush.bf16.msrb.mxu0 %v4103_v10 }
 0x1d6   :  { %2914 = vmatpush.bf16.msra.mxu2 %v4666_v56 }
 0x1d8   :  { %2815 = vmatpush.bf16.msra.mxu0 %v4651_v26  ;;  %v4660_v26 = vld [vmem:[#allocation14] sm:$0xff] }
 0x1da   :  { %2915 = vmatpush.bf16.msra.mxu2 %v4665_v57 }
 0x1de   :  { %2916 = vmatpush.bf16.msra.mxu2 %v4664_v59 }
 0x1e2   :  { %2917 = vmatpush.bf16.msra.mxu2 %v4663_v17 }
 0x1e6   :  { %2918 = vmatpush.bf16.msra.mxu2 %v4662_v21 }
 0x1ea   :  { %2919 = vmatpush.bf16.msra.mxu2 %v4661_v24 }
 0x1ee   :  { %2920 = vmatpush.bf16.msra.mxu2 %v4660_v26 }
 0x217   :  { %v2340_v23 = vpop.f32.mrf.mxu2  ;;  %v2353_v28 = vpop.f32.mrf.mxu3 }
 0x218   :  { %v2341_v20 = vadd.f32 %v2340_v23, %v5071_v42  ;;  %v4650_v42 = vld [vmem:[#allocation12 + $0x30] sm:$0xff] }
 0x219   :  { %2816 = vmatpush.bf16.msra.mxu0 %v4650_v42 }
 0x21a   :  { %v2354_v35 = vadd.f32 %v2353_v28, %v2341_v20 }
 0x21c   :  { %v2409_v12 = vmax.f32 %v2354_v35, 0.0 }
 0x21d   :  { %2817 = vmatpush.bf16.msra.mxu0 %v4649_v44 }
 0x21f   :  { %v2342_v29 = vpop.f32.mrf.mxu2  ;;  %v2355_v30 = vpop.f32.mrf.mxu3 }
 0x221   :  { %2818 = vmatpush.bf16.msra.mxu0 %v4648_v46 }
 0x225   :  { %2819 = vmatpush.bf16.msra.mxu0 %v4647_v48 }
 0x227   :  { %v2392_v33 = vpop.f32.mrf.mxu2  ;;  %v2405_v34 = vpop.f32.mrf.mxu3 }
 0x228   :  { %v2393_v41 = vadd.f32 %v2392_v33, %v5073_v45  ;;  %v4657_v45 = vld [vmem:[#allocation12 + $0x68] sm:$0xff] }
 0x229   :  { %2830 = vmatpush.bf16.msra.mxu1 %v4657_v45  ;;  %2820 = vmatpush.bf16.msra.mxu0 %v4646_v50 }
 0x22a   :  { %v2406_v31 = vadd.f32 %v2405_v34, %v2393_v41 }
 0x22c   :  { %v2410_v1 = vmax.f32 %v2406_v31, 0.0  ;;  %v4683_v31 = vld [vmem:[%s5099_s10] ss:$0 sm:$0xff] }
 0x22d   :  { %2831 = vmatpush.bf16.msra.mxu1 %v4656_v47  ;;  %2821 = vmatpush.bf16.msra.mxu0 %v4645_v25 }
 0x22e   :  { %v2411_v36 = vpack.c.bf16 %v2410_v1, %v2409_v12 }
 0x22f   :  { %v2394_v40 = vpop.f32.mrf.mxu2  ;;  %v2407_v6 = vpop.f32.mrf.mxu3 }
 0x230   :  { %v2453_v38 = vunpack.c.l.b16 %v2411_v36  ;;  %v2454_v37 = vunpack.c.h.b16 %v2411_v36 }
 0x231   :  { %2832 = vmatpush.bf16.msra.mxu1 %v4655_v49  ;;  %2822 = vmatpush.bf16.msra.mxu0 %v4644_v53 }
 0x232   :  { %v2455_v39 = vpack.c.b16 %v2453_v38, %v2453_v38  ;;  %v2456_v43 = vpack.c.b16 %v2454_v37, %v2454_v37 }
 0x234   :  { %2627 = vmatmul.bf16.vlgmr.msrb.gmra.mxu0 %v2455_v39  ;;  %2640 = vmatmul.bf16.vlgmr.msrb.gmra.mxu1 %v2456_v43 }
 0x235   :  { %2653 = vmatmul.bf16.vlgmr.msrb.gmra.mxu2 %v2455_v39  ;;  %2666 = vmatmul.bf16.vlgmr.msrb.gmra.mxu3 %v2456_v43 }
 0x236   :  { %2833 = vmatpush.bf16.msra.mxu1 %v4654_v51 }
 0x23a   :  { %2834 = vmatpush.bf16.msra.mxu1 %v4653_v52 }
 0x23e   :  { %2835 = vmatpush.bf16.msra.mxu1 %v4652_v54 }
 0x2b1   :  { %v2628_v15 = vpop.f32.mrf.mxu0  ;;  %v2641_v61 = vpop.f32.mrf.mxu1 }
 0x2b2   :  { %v2629_v62 = vadd.f32 %v2628_v15, %v2448_v60 }
 0x2b4   :  { %v2642_v19 = vadd.f32 %v2641_v61, %v2629_v62 }
 0x2b6   :  { %v2671_v32 = vmax.f32 %v2642_v19, 0.0 }
 0x2b8   :  { %v2654_v63 = vpop.f32.mrf.mxu2  ;;  %v2667_v18 = vpop.f32.mrf.mxu3 }
 0x2b9   :  { %v2655_v3 = vadd.f32 %v2654_v63, %v2449_v22  ;;  %v2630_v4 = vpop.f32.mrf.mxu0  ;;  %v2643_v5 = vpop.f32.mrf.mxu1 }
 0x2bb   :  { %v2668_v7 = vadd.f32 %v2667_v18, %v2655_v3 }
 0x2bd   :  { %v2672_v8 = vmax.f32 %v2668_v7, 0.0 }
 0x2bf   :  { %v2673_v9 = vpack.c.bf16 %v2672_v8, %v2671_v32 }
 0x2c0   :  { %v2656_v10 = vpop.f32.mrf.mxu2  ;;  %v2669_v11 = vpop.f32.mrf.mxu3 }
 0x2c1   :  { %2674 = vst [vmem:[#allocation2] sm:$0xff] %v2673_v9  ;;  %v2713_v13 = vunpack.c.l.b16 %v2673_v9  ;;  %v2714_v14 = vunpack.c.h.b16 %v2673_v9 }
 0x2c3   :  { %v2715_v0 = vpack.c.b16 %v2713_v13, %v2713_v13  ;;  %v2716_v16 = vpack.c.b16 %v2714_v14, %v2714_v14 }
 0x2c5   :  { %2823 = vmatmul.bf16.vlgmr.msra.gmra.mxu0 %v2715_v0  ;;  %2836 = vmatmul.bf16.vlgmr.msra.gmra.mxu1 %v2716_v16 }
 0x342   :  { %v2824_v23 = vpop.f32.mrf.mxu0  ;;  %v2837_v28 = vpop.f32.mrf.mxu1 }
 0x343   :  { %v2825_v29 = vadd.f32 %v4682_v27, %v2824_v23 }
 0x345   :  { %v2838_v30 = vadd.f32 %v2837_v28, %v2825_v29 }
 0x347   :  { %v2841_v20 = vmax.f32 %v2838_v30, 0.0 }
 0x349   :  { %v2842_v33 = vpack.c.bf16 %v2841_v20, %v2841_v20 }
 0x34a   :  { %v2826_v34 = vpop.f32.mrf.mxu0  ;;  %v2839_v35 = vpop.f32.mrf.mxu1 }
 0x34b   :  { %2843 = vst [vmem:[#allocation2] sm:$0xf] %v2842_v33 }
 0x352   :  { %v2844_v41 = vld [vmem:[#allocation2] sm:$0xf] }
 0x353   :  { %2921 = vmatmul.bf16.vlgmr.msra.gmra.mxu2 %v2844_v41 }
 0x3d6   :  { %v2922_v12 = vpop.f32.mrf.mxu2 }
 0x3d7   :  { %v2923_v1 = vadd.f32 %v4683_v31, %v2922_v12 }
 0x3d9   :  { %v2926_v36 = vpack.c.bf16 %v2923_v1, %v2923_v1 }
 0x3db   :  { %2927 = vst [vmem:[#allocation15] sm:$0xf] %v2926_v36 }
 0x3dc   :  { %2938 = dma.vmem_to_hbm [thread:$0]  %s2934_s18, 64, %s2936_s20, [#allocation5]  }
 0x3de   :  { %v2924_v40 = vpop.f32.mrf.mxu2 }
 0x3df   :  { %4884 = dma.done.wait [#allocation5], 64  }
 0x3e0   :  { %4885 = vsyncadd [#allocation5], 4294967232 }
 0x3e1   :  { %2943 = vsyncpa [#allocation4], 1 }
 0x3e2   :  { %2944 = vsyncpa [#allocation7], 1 }
 0x3e3   :  { %2945 = vsyncpa [#allocation10], 1 }
 0x3e4   :  { %2946 = vsyncpa [#allocation13], 1 }
 0x3e5   :  { %2947 = vsyncpa [#allocation5], 1 }

</bundles_post_ra>
